<compile_context>
chip_gen: v5e
topology: v5e:2x2
jax: 0.10.0
libtpu: 0.0.40
codegen_flags: <defaults>
</compile_context>

<pallas_src>
import functools

import jax
import jax.numpy as jnp
from jax import lax
from jax.experimental import pallas as pl
from jax.experimental.pallas import tpu as pltpu

EPS = 1e-5  # PyTorch BatchNorm2d default eps


def _cyclic_shift(x, d):
    """y[:, k] = x[:, (k + d) % L] for a (1, L) value; d is a static int."""
    if d == 0:
        return x
    return jnp.concatenate([x[:, d:], x[:, :d]], axis=1)


# ---------------------------------------------------------------------------
# Fused kernel.  Grid = (N,).  One image per step, everything in registers.
#   inputs : x (C, HW) VMEM | masks (K*K, HW) VMEM | w2 cols (Cout, C*K*K) VMEM
#            s1, b1, w1(flat), s2, b2, [a, b] in SMEM
#   output : (Cout, HW) lane-dense block
# ---------------------------------------------------------------------------
def _fused_resblock_kernel(x_ref, masks_ref, w2c_ref, s1_ref, b1_ref, w1_ref,
                           s2_ref, b2_ref, ab_ref, o_ref, *,
                           C, Cout, K, HW, offsets):
    # ---- BN1 -> ReLU -> 1x1 conv -> (dropout1 = id) -> BN2 -> ReLU ----
    # Per-channel flat (1, HW) planes; stays entirely in registers.
    # NOTE: for large channel counts (>= ~64-128) conv1/conv2 should become
    # bf16 MXU matmuls; with C = 4 the VPU scalar-MAC path is faster.
    t = [jnp.maximum(x_ref[ci:ci + 1, :] * s1_ref[ci] + b1_ref[ci], 0.0)
         for ci in range(C)]
    p = []
    for co in range(C):
        u = t[0] * w1_ref[co * C + 0]
        for ci in range(1, C):
            u = u + t[ci] * w1_ref[co * C + ci]
        p.append(jnp.maximum(u * s2_ref[co] + b2_ref[co], 0.0))

    # ---- KxK conv as shift(+mask) MACs on the flat lane axis ----
    # tap[k] = p[ci, (k + D) % HW] * border_mask; garbage from the wrap /
    # row-crossing is zeroed by the mask (values are finite post-ReLU).
    KK = K * K
    acc = jnp.zeros((Cout, HW), jnp.float32)
    for tix in range(KK):
        D = offsets[tix]
        d = D % HW
        m = None if D == 0 else masks_ref[tix:tix + 1, :]      # (1, HW)
        for ci in range(C):
            if D == 0:
                tap = p[ci]                       # center tap: mask is all ones
            else:
                tap = _cyclic_shift(p[ci], d) * m
            col = ci * KK + tix
            w_col = w2c_ref[:, col:col + 1]       # (Cout, 1)
            acc = acc + w_col * tap               # dense over output channels

    # ---- (dropout2 = id) + residual combine a*x + b*out, single store ----
    a = ab_ref[0]
    b = ab_ref[1]
    o_ref[...] = a * x_ref[...] + b * acc


# ---------------------------------------------------------------------------
# Wrapper (public API: NCHW in, NCHW out)
# ---------------------------------------------------------------------------
def residual_block_2dconv(x_nchw, params, *, kernelsize, stride, padding,
                          dilation, a=1.0, b=1.0):
    x = x_nchw.astype(jnp.float32)
    N, C, H, W = x.shape
    w1 = params["conv1_w"].astype(jnp.float32)      # (C, C, 1, 1)
    w2 = params["conv2_w"].astype(jnp.float32)      # (Cout, C, K, K)
    Cout = w2.shape[0]
    K = kernelsize
    HW = H * W

    # Fold BN (eval mode, running stats) into per-channel scale/bias.
    s1 = params["bn1_gamma"] / jnp.sqrt(params["bn1_var"] + EPS)
    b1 = params["bn1_beta"] - params["bn1_mean"] * s1
    s2 = params["bn2_gamma"] / jnp.sqrt(params["bn2_var"] + EPS)
    b2 = params["bn2_beta"] - params["bn2_mean"] * s2

    Hout = (H + 2 * padding - dilation * (K - 1) - 1) // stride + 1
    Wout = (W + 2 * padding - dilation * (K - 1) - 1) // stride + 1
    # TODO(synk): `downsample` is an arbitrary user-supplied nn.Module; only
    # downsample=None (identity residual, shape-preserving conv2, stride==1)
    # is implemented.
    assert stride == 1 and (Hout, Wout, Cout) == (H, W, C), \
        "downsample=None requires a shape-preserving conv2 (stride=1, 2*padding == dilation*(K-1))"

    # Static per-tap flat offsets and border-validity masks for the shift-conv.
    offsets = []
    mask_rows = []
    rr = jnp.arange(H)[:, None]
    cc = jnp.arange(W)[None, :]
    for i in range(K):
        for j in range(K):
            di = i * dilation - padding
            dj = j * dilation - padding
            offsets.append(di * W + dj)
            valid = ((rr + di >= 0) & (rr + di < H) &
                     (cc + dj >= 0) & (cc + dj < W))
            mask_rows.append(valid.astype(jnp.float32).reshape(HW))
    masks = jnp.stack(mask_rows, axis=0)                     # (K*K, HW)

    # Lane-dense layouts (free reshapes outside the kernel).
    x_flat = x.reshape(N, C, HW)
    w1_flat = w1[:, :, 0, 0].reshape(-1)                     # SMEM, [co*C + ci]
    w2_cols = w2.reshape(Cout, C * K * K)                    # VMEM, col = ci*K*K + i*K + j
    ab = jnp.array([a, b], jnp.float32)

    # VMEM budget from hardware with headroom for compiler-internal scratch.
    step_bytes = 4 * (2 * C * HW + 2 * Cout * HW + 2 * K * K * HW
                      + 2 * Cout * C * K * K)
    try:
        cap = int(getattr(pltpu.get_tpu_info(), "vmem_capacity_bytes",
                          64 * 1024 * 1024))
    except Exception:
        cap = 64 * 1024 * 1024
    vmem_limit = max(8 * step_bytes, 4 * 1024 * 1024)
    vmem_limit = int(min(vmem_limit, max(cap - 16 * 1024 * 1024,
                                         4 * 1024 * 1024)))

    kernel = functools.partial(_fused_resblock_kernel, C=C, Cout=Cout, K=K,
                               HW=HW, offsets=tuple(offsets))

    smem = pl.BlockSpec(memory_space=pltpu.MemorySpace.SMEM)

    out_flat = pl.pallas_call(
        kernel,
        out_shape=jax.ShapeDtypeStruct((N, Cout, HW), jnp.float32),
        grid_spec=pltpu.PrefetchScalarGridSpec(
            num_scalar_prefetch=0,
            grid=(N,),
            in_specs=[
                pl.BlockSpec((None, C, HW), lambda n: (n, 0, 0)),    # x
                pl.BlockSpec((K * K, HW), lambda n: (0, 0)),         # masks
                pl.BlockSpec((Cout, C * K * K), lambda n: (0, 0)),   # w2 cols
                smem,   # s1
                smem,   # b1
                smem,   # w1 (flat)
                smem,   # s2
                smem,   # b2
                smem,   # [a, b]
            ],
            out_specs=pl.BlockSpec((None, Cout, HW), lambda n: (n, 0, 0)),
        ),
        compiler_params=pltpu.CompilerParams(
            dimension_semantics=("parallel",),
            vmem_limit_bytes=vmem_limit),
    )(x_flat, masks, w2_cols, s1, b1, w1_flat, s2, b2, ab)

    return out_flat.reshape(N, Cout, H, W)


# ---------------------------------------------------------------------------
# Pure-JAX reference (NCHW, lax convs) for correctness checking.
# ---------------------------------------------------------------------------
def ref_forward(x, params, *, kernelsize, stride, padding, dilation, a, b):
    def bn(t, g, bt, m, v):
        g, bt, m, v = (u[None, :, None, None] for u in (g, bt, m, v))
        return (t - m) / jnp.sqrt(v + EPS) * g + bt

    out = bn(x, params["bn1_gamma"], params["bn1_beta"],
             params["bn1_mean"], params["bn1_var"])
    out = jnp.maximum(out, 0.0)
    out = lax.conv_general_dilated(out, params["conv1_w"], (1, 1), "VALID",
                                   rhs_dilation=(dilation, dilation),
                                   dimension_numbers=("NCHW", "OIHW", "NCHW"))
    out = bn(out, params["bn2_gamma"], params["bn2_beta"],
             params["bn2_mean"], params["bn2_var"])
    out = jnp.maximum(out, 0.0)
    out = lax.conv_general_dilated(out, params["conv2_w"], (stride, stride),
                                   [(padding, padding), (padding, padding)],
                                   rhs_dilation=(dilation, dilation),
                                   dimension_numbers=("NCHW", "OIHW", "NCHW"))
    return a * x + b * out


if __name__ == "__main__":
    # Module config: channels_in=channels_out=4, kernelsize=3, stride=1,
    # padding=1, dilation=1, downsample=None.
    N, Cin, H, W = 2, 4, 16, 16
    Cout, K, stride, padding, dilation = 4, 3, 1, 1, 1
    a, b = 0.9, 1.1

    key = jax.random.PRNGKey(0)
    ks = jax.random.split(key, 11)
    params = {
        "conv1_w":  0.2 * jax.random.normal(ks[0], (Cin, Cin, 1, 1), jnp.float32),
        "conv2_w":  0.2 * jax.random.normal(ks[1], (Cout, Cin, K, K), jnp.float32),
        "bn1_gamma": 1.0 + 0.1 * jax.random.normal(ks[2], (Cin,), jnp.float32),
        "bn1_beta":  0.1 * jax.random.normal(ks[3], (Cin,), jnp.float32),
        "bn1_mean":  0.1 * jax.random.normal(ks[4], (Cin,), jnp.float32),
        "bn1_var":   0.5 + jnp.abs(jax.random.normal(ks[5], (Cin,), jnp.float32)),
        "bn2_gamma": 1.0 + 0.1 * jax.random.normal(ks[6], (Cin,), jnp.float32),
        "bn2_beta":  0.1 * jax.random.normal(ks[7], (Cin,), jnp.float32),
        "bn2_mean":  0.1 * jax.random.normal(ks[8], (Cin,), jnp.float32),
        "bn2_var":   0.5 + jnp.abs(jax.random.normal(ks[9], (Cin,), jnp.float32)),
    }
    x = jax.random.normal(ks[10], (N, Cin, H, W), jnp.float32)

    out = residual_block_2dconv(x, params, kernelsize=K, stride=stride,
                                padding=padding, dilation=dilation, a=a, b=b)
    out = jax.block_until_ready(out)

    ref = ref_forward(x, params, kernelsize=K, stride=stride,
                      padding=padding, dilation=dilation, a=a, b=b)
    assert out.shape == ref.shape == (N, Cout, H, W)
    assert jnp.allclose(out, ref, atol=1e-4, rtol=1e-4), \
        f"max abs err {jnp.max(jnp.abs(out - ref))}"

    print("KERNEL_OK")
</pallas_src>

<mosaic_0001>
module attributes {stable_mosaic.version = 11 : i64} {
  func.func @_fused_resblock_kernel(%arg0: i32, %arg1: memref<1x4x256xf32, #tpu.memory_space<vmem>>, %arg2: memref<9x256xf32, #tpu.memory_space<vmem>>, %arg3: memref<4x36xf32, #tpu.memory_space<vmem>>, %arg4: memref<4xf32, #tpu.memory_space<smem>>, %arg5: memref<4xf32, #tpu.memory_space<smem>>, %arg6: memref<16xf32, #tpu.memory_space<smem>>, %arg7: memref<4xf32, #tpu.memory_space<smem>>, %arg8: memref<4xf32, #tpu.memory_space<smem>>, %arg9: memref<2xf32, #tpu.memory_space<smem>>, %arg10: memref<1x4x256xf32, #tpu.memory_space<vmem>>) attributes {dimension_semantics = [#tpu.dimension_semantics<parallel>], iteration_bounds = array<i64: 2>, scalar_prefetch = 0 : i64, scratch_operands = 0 : i64, tpu.core_type = #tpu.core_type<tc>, window_params = [{transform_indices = @transform_0, window_bounds = array<i64: 1, 4, 256>}, {pipeline_mode = #tpu.pipeline_mode<synchronous>, transform_indices = @transform_1, window_bounds = array<i64: 9, 256>}, {pipeline_mode = #tpu.pipeline_mode<synchronous>, transform_indices = @transform_2, window_bounds = array<i64: 4, 36>}, {transform_indices = @transform_3, window_bounds = array<i64: 4>}, {transform_indices = @transform_4, window_bounds = array<i64: 4>}, {transform_indices = @transform_5, window_bounds = array<i64: 16>}, {transform_indices = @transform_6, window_bounds = array<i64: 4>}, {transform_indices = @transform_7, window_bounds = array<i64: 4>}, {transform_indices = @transform_8, window_bounds = array<i64: 2>}, {transform_indices = @transform_9, window_bounds = array<i64: 1, 4, 256>}]} {
    %c0 = arith.constant 0 : index
    %c0_0 = arith.constant 0 : index
    %c0_1 = arith.constant 0 : index
    %0 = vector.load %arg1[%c0, %c0_0, %c0_1] : memref<1x4x256xf32, #tpu.memory_space<vmem>>, vector<1x1x256xf32>
    %1 = vector.shape_cast %0 : vector<1x1x256xf32> to vector<1x256xf32>
    %c0_2 = arith.constant 0 : index
    %2 = memref.load %arg4[%c0_2] : memref<4xf32, #tpu.memory_space<smem>>
    %3 = vector.broadcast %2 : f32 to vector<1x256xf32>
    %4 = arith.mulf %1, %3 : vector<1x256xf32>
    %c0_3 = arith.constant 0 : index
    %5 = memref.load %arg5[%c0_3] : memref<4xf32, #tpu.memory_space<smem>>
    %6 = vector.broadcast %5 : f32 to vector<1x256xf32>
    %7 = arith.addf %4, %6 : vector<1x256xf32>
    %cst = arith.constant 0.000000e+00 : f32
    %8 = vector.broadcast %cst : f32 to vector<1x256xf32>
    %9 = arith.maximumf %7, %8 : vector<1x256xf32>
    %c0_4 = arith.constant 0 : index
    %c1 = arith.constant 1 : index
    %c0_5 = arith.constant 0 : index
    %10 = vector.load %arg1[%c0_4, %c1, %c0_5] : memref<1x4x256xf32, #tpu.memory_space<vmem>>, vector<1x1x256xf32>
    %11 = vector.shape_cast %10 : vector<1x1x256xf32> to vector<1x256xf32>
    %c1_6 = arith.constant 1 : index
    %12 = memref.load %arg4[%c1_6] : memref<4xf32, #tpu.memory_space<smem>>
    %13 = vector.broadcast %12 : f32 to vector<1x256xf32>
    %14 = arith.mulf %11, %13 : vector<1x256xf32>
    %c1_7 = arith.constant 1 : index
    %15 = memref.load %arg5[%c1_7] : memref<4xf32, #tpu.memory_space<smem>>
    %16 = vector.broadcast %15 : f32 to vector<1x256xf32>
    %17 = arith.addf %14, %16 : vector<1x256xf32>
    %cst_8 = arith.constant 0.000000e+00 : f32
    %18 = vector.broadcast %cst_8 : f32 to vector<1x256xf32>
    %19 = arith.maximumf %17, %18 : vector<1x256xf32>
    %c0_9 = arith.constant 0 : index
    %c2 = arith.constant 2 : index
    %c0_10 = arith.constant 0 : index
    %20 = vector.load %arg1[%c0_9, %c2, %c0_10] : memref<1x4x256xf32, #tpu.memory_space<vmem>>, vector<1x1x256xf32>
    %21 = vector.shape_cast %20 : vector<1x1x256xf32> to vector<1x256xf32>
    %c2_11 = arith.constant 2 : index
    %22 = memref.load %arg4[%c2_11] : memref<4xf32, #tpu.memory_space<smem>>
    %23 = vector.broadcast %22 : f32 to vector<1x256xf32>
    %24 = arith.mulf %21, %23 : vector<1x256xf32>
    %c2_12 = arith.constant 2 : index
    %25 = memref.load %arg5[%c2_12] : memref<4xf32, #tpu.memory_space<smem>>
    %26 = vector.broadcast %25 : f32 to vector<1x256xf32>
    %27 = arith.addf %24, %26 : vector<1x256xf32>
    %cst_13 = arith.constant 0.000000e+00 : f32
    %28 = vector.broadcast %cst_13 : f32 to vector<1x256xf32>
    %29 = arith.maximumf %27, %28 : vector<1x256xf32>
    %c0_14 = arith.constant 0 : index
    %c3 = arith.constant 3 : index
    %c0_15 = arith.constant 0 : index
    %30 = vector.load %arg1[%c0_14, %c3, %c0_15] : memref<1x4x256xf32, #tpu.memory_space<vmem>>, vector<1x1x256xf32>
    %31 = vector.shape_cast %30 : vector<1x1x256xf32> to vector<1x256xf32>
    %c3_16 = arith.constant 3 : index
    %32 = memref.load %arg4[%c3_16] : memref<4xf32, #tpu.memory_space<smem>>
    %33 = vector.broadcast %32 : f32 to vector<1x256xf32>
    %34 = arith.mulf %31, %33 : vector<1x256xf32>
    %c3_17 = arith.constant 3 : index
    %35 = memref.load %arg5[%c3_17] : memref<4xf32, #tpu.memory_space<smem>>
    %36 = vector.broadcast %35 : f32 to vector<1x256xf32>
    %37 = arith.addf %34, %36 : vector<1x256xf32>
    %cst_18 = arith.constant 0.000000e+00 : f32
    %38 = vector.broadcast %cst_18 : f32 to vector<1x256xf32>
    %39 = arith.maximumf %37, %38 : vector<1x256xf32>
    %c0_19 = arith.constant 0 : index
    %40 = memref.load %arg6[%c0_19] : memref<16xf32, #tpu.memory_space<smem>>
    %41 = vector.broadcast %40 : f32 to vector<1x256xf32>
    %42 = arith.mulf %9, %41 : vector<1x256xf32>
    %c1_20 = arith.constant 1 : index
    %43 = memref.load %arg6[%c1_20] : memref<16xf32, #tpu.memory_space<smem>>
    %44 = vector.broadcast %43 : f32 to vector<1x256xf32>
    %45 = arith.mulf %19, %44 : vector<1x256xf32>
    %46 = arith.addf %42, %45 : vector<1x256xf32>
    %c2_21 = arith.constant 2 : index
    %47 = memref.load %arg6[%c2_21] : memref<16xf32, #tpu.memory_space<smem>>
    %48 = vector.broadcast %47 : f32 to vector<1x256xf32>
    %49 = arith.mulf %29, %48 : vector<1x256xf32>
    %50 = arith.addf %46, %49 : vector<1x256xf32>
    %c3_22 = arith.constant 3 : index
    %51 = memref.load %arg6[%c3_22] : memref<16xf32, #tpu.memory_space<smem>>
    %52 = vector.broadcast %51 : f32 to vector<1x256xf32>
    %53 = arith.mulf %39, %52 : vector<1x256xf32>
    %54 = arith.addf %50, %53 : vector<1x256xf32>
    %c0_23 = arith.constant 0 : index
    %55 = memref.load %arg7[%c0_23] : memref<4xf32, #tpu.memory_space<smem>>
    %56 = vector.broadcast %55 : f32 to vector<1x256xf32>
    %57 = arith.mulf %54, %56 : vector<1x256xf32>
    %c0_24 = arith.constant 0 : index
    %58 = memref.load %arg8[%c0_24] : memref<4xf32, #tpu.memory_space<smem>>
    %59 = vector.broadcast %58 : f32 to vector<1x256xf32>
    %60 = arith.addf %57, %59 : vector<1x256xf32>
    %cst_25 = arith.constant 0.000000e+00 : f32
    %61 = vector.broadcast %cst_25 : f32 to vector<1x256xf32>
    %62 = arith.maximumf %60, %61 : vector<1x256xf32>
    %c4 = arith.constant 4 : index
    %63 = memref.load %arg6[%c4] : memref<16xf32, #tpu.memory_space<smem>>
    %64 = vector.broadcast %63 : f32 to vector<1x256xf32>
    %65 = arith.mulf %9, %64 : vector<1x256xf32>
    %c5 = arith.constant 5 : index
    %66 = memref.load %arg6[%c5] : memref<16xf32, #tpu.memory_space<smem>>
    %67 = vector.broadcast %66 : f32 to vector<1x256xf32>
    %68 = arith.mulf %19, %67 : vector<1x256xf32>
    %69 = arith.addf %65, %68 : vector<1x256xf32>
    %c6 = arith.constant 6 : index
    %70 = memref.load %arg6[%c6] : memref<16xf32, #tpu.memory_space<smem>>
    %71 = vector.broadcast %70 : f32 to vector<1x256xf32>
    %72 = arith.mulf %29, %71 : vector<1x256xf32>
    %73 = arith.addf %69, %72 : vector<1x256xf32>
    %c7 = arith.constant 7 : index
    %74 = memref.load %arg6[%c7] : memref<16xf32, #tpu.memory_space<smem>>
    %75 = vector.broadcast %74 : f32 to vector<1x256xf32>
    %76 = arith.mulf %39, %75 : vector<1x256xf32>
    %77 = arith.addf %73, %76 : vector<1x256xf32>
    %c1_26 = arith.constant 1 : index
    %78 = memref.load %arg7[%c1_26] : memref<4xf32, #tpu.memory_space<smem>>
    %79 = vector.broadcast %78 : f32 to vector<1x256xf32>
    %80 = arith.mulf %77, %79 : vector<1x256xf32>
    %c1_27 = arith.constant 1 : index
    %81 = memref.load %arg8[%c1_27] : memref<4xf32, #tpu.memory_space<smem>>
    %82 = vector.broadcast %81 : f32 to vector<1x256xf32>
    %83 = arith.addf %80, %82 : vector<1x256xf32>
    %cst_28 = arith.constant 0.000000e+00 : f32
    %84 = vector.broadcast %cst_28 : f32 to vector<1x256xf32>
    %85 = arith.maximumf %83, %84 : vector<1x256xf32>
    %c8 = arith.constant 8 : index
    %86 = memref.load %arg6[%c8] : memref<16xf32, #tpu.memory_space<smem>>
    %87 = vector.broadcast %86 : f32 to vector<1x256xf32>
    %88 = arith.mulf %9, %87 : vector<1x256xf32>
    %c9 = arith.constant 9 : index
    %89 = memref.load %arg6[%c9] : memref<16xf32, #tpu.memory_space<smem>>
    %90 = vector.broadcast %89 : f32 to vector<1x256xf32>
    %91 = arith.mulf %19, %90 : vector<1x256xf32>
    %92 = arith.addf %88, %91 : vector<1x256xf32>
    %c10 = arith.constant 10 : index
    %93 = memref.load %arg6[%c10] : memref<16xf32, #tpu.memory_space<smem>>
    %94 = vector.broadcast %93 : f32 to vector<1x256xf32>
    %95 = arith.mulf %29, %94 : vector<1x256xf32>
    %96 = arith.addf %92, %95 : vector<1x256xf32>
    %c11 = arith.constant 11 : index
    %97 = memref.load %arg6[%c11] : memref<16xf32, #tpu.memory_space<smem>>
    %98 = vector.broadcast %97 : f32 to vector<1x256xf32>
    %99 = arith.mulf %39, %98 : vector<1x256xf32>
    %100 = arith.addf %96, %99 : vector<1x256xf32>
    %c2_29 = arith.constant 2 : index
    %101 = memref.load %arg7[%c2_29] : memref<4xf32, #tpu.memory_space<smem>>
    %102 = vector.broadcast %101 : f32 to vector<1x256xf32>
    %103 = arith.mulf %100, %102 : vector<1x256xf32>
    %c2_30 = arith.constant 2 : index
    %104 = memref.load %arg8[%c2_30] : memref<4xf32, #tpu.memory_space<smem>>
    %105 = vector.broadcast %104 : f32 to vector<1x256xf32>
    %106 = arith.addf %103, %105 : vector<1x256xf32>
    %cst_31 = arith.constant 0.000000e+00 : f32
    %107 = vector.broadcast %cst_31 : f32 to vector<1x256xf32>
    %108 = arith.maximumf %106, %107 : vector<1x256xf32>
    %c12 = arith.constant 12 : index
    %109 = memref.load %arg6[%c12] : memref<16xf32, #tpu.memory_space<smem>>
    %110 = vector.broadcast %109 : f32 to vector<1x256xf32>
    %111 = arith.mulf %9, %110 : vector<1x256xf32>
    %c13 = arith.constant 13 : index
    %112 = memref.load %arg6[%c13] : memref<16xf32, #tpu.memory_space<smem>>
    %113 = vector.broadcast %112 : f32 to vector<1x256xf32>
    %114 = arith.mulf %19, %113 : vector<1x256xf32>
    %115 = arith.addf %111, %114 : vector<1x256xf32>
    %c14 = arith.constant 14 : index
    %116 = memref.load %arg6[%c14] : memref<16xf32, #tpu.memory_space<smem>>
    %117 = vector.broadcast %116 : f32 to vector<1x256xf32>
    %118 = arith.mulf %29, %117 : vector<1x256xf32>
    %119 = arith.addf %115, %118 : vector<1x256xf32>
    %c15 = arith.constant 15 : index
    %120 = memref.load %arg6[%c15] : memref<16xf32, #tpu.memory_space<smem>>
    %121 = vector.broadcast %120 : f32 to vector<1x256xf32>
    %122 = arith.mulf %39, %121 : vector<1x256xf32>
    %123 = arith.addf %119, %122 : vector<1x256xf32>
    %c3_32 = arith.constant 3 : index
    %124 = memref.load %arg7[%c3_32] : memref<4xf32, #tpu.memory_space<smem>>
    %125 = vector.broadcast %124 : f32 to vector<1x256xf32>
    %126 = arith.mulf %123, %125 : vector<1x256xf32>
    %c3_33 = arith.constant 3 : index
    %127 = memref.load %arg8[%c3_33] : memref<4xf32, #tpu.memory_space<smem>>
    %128 = vector.broadcast %127 : f32 to vector<1x256xf32>
    %129 = arith.addf %126, %128 : vector<1x256xf32>
    %cst_34 = arith.constant 0.000000e+00 : f32
    %130 = vector.broadcast %cst_34 : f32 to vector<1x256xf32>
    %131 = arith.maximumf %129, %130 : vector<1x256xf32>
    %cst_35 = arith.constant 0.000000e+00 : f32
    %132 = vector.broadcast %cst_35 : f32 to vector<4x256xf32>
    %c0_36 = arith.constant 0 : index
    %c0_37 = arith.constant 0 : index
    %133 = vector.load %arg2[%c0_36, %c0_37] : memref<9x256xf32, #tpu.memory_space<vmem>>, vector<1x256xf32>
    %134 = vector.extract_strided_slice %62 {offsets = [0, 239], sizes = [1, 17], strides = [1, 1]} : vector<1x256xf32> to vector<1x17xf32>
    %135 = vector.extract_strided_slice %62 {offsets = [0, 0], sizes = [1, 239], strides = [1, 1]} : vector<1x256xf32> to vector<1x239xf32>
    %136 = tpu.concatenate %134, %135 in 1 : vector<1x17xf32>, vector<1x239xf32> -> vector<1x256xf32>
    %137 = arith.mulf %136, %133 : vector<1x256xf32>
    %c0_38 = arith.constant 0 : index
    %c0_39 = arith.constant 0 : index
    %138 = vector.load %arg3[%c0_38, %c0_39] : memref<4x36xf32, #tpu.memory_space<vmem>>, vector<4x1xf32>
    %139 = vector.broadcast %138 : vector<4x1xf32> to vector<4x256xf32>
    %140 = vector.broadcast %137 : vector<1x256xf32> to vector<4x256xf32>
    %141 = arith.mulf %139, %140 : vector<4x256xf32>
    %142 = arith.addf %132, %141 : vector<4x256xf32>
    %143 = vector.extract_strided_slice %85 {offsets = [0, 239], sizes = [1, 17], strides = [1, 1]} : vector<1x256xf32> to vector<1x17xf32>
    %144 = vector.extract_strided_slice %85 {offsets = [0, 0], sizes = [1, 239], strides = [1, 1]} : vector<1x256xf32> to vector<1x239xf32>
    %145 = tpu.concatenate %143, %144 in 1 : vector<1x17xf32>, vector<1x239xf32> -> vector<1x256xf32>
    %146 = arith.mulf %145, %133 : vector<1x256xf32>
    %c0_40 = arith.constant 0 : index
    %c9_41 = arith.constant 9 : index
    %147 = vector.load %arg3[%c0_40, %c9_41] : memref<4x36xf32, #tpu.memory_space<vmem>>, vector<4x1xf32>
    %148 = vector.broadcast %147 : vector<4x1xf32> to vector<4x256xf32>
    %149 = vector.broadcast %146 : vector<1x256xf32> to vector<4x256xf32>
    %150 = arith.mulf %148, %149 : vector<4x256xf32>
    %151 = arith.addf %142, %150 : vector<4x256xf32>
    %152 = vector.extract_strided_slice %108 {offsets = [0, 239], sizes = [1, 17], strides = [1, 1]} : vector<1x256xf32> to vector<1x17xf32>
    %153 = vector.extract_strided_slice %108 {offsets = [0, 0], sizes = [1, 239], strides = [1, 1]} : vector<1x256xf32> to vector<1x239xf32>
    %154 = tpu.concatenate %152, %153 in 1 : vector<1x17xf32>, vector<1x239xf32> -> vector<1x256xf32>
    %155 = arith.mulf %154, %133 : vector<1x256xf32>
    %c0_42 = arith.constant 0 : index
    %c18 = arith.constant 18 : index
    %156 = vector.load %arg3[%c0_42, %c18] : memref<4x36xf32, #tpu.memory_space<vmem>>, vector<4x1xf32>
    %157 = vector.broadcast %156 : vector<4x1xf32> to vector<4x256xf32>
    %158 = vector.broadcast %155 : vector<1x256xf32> to vector<4x256xf32>
    %159 = arith.mulf %157, %158 : vector<4x256xf32>
    %160 = arith.addf %151, %159 : vector<4x256xf32>
    %161 = vector.extract_strided_slice %131 {offsets = [0, 239], sizes = [1, 17], strides = [1, 1]} : vector<1x256xf32> to vector<1x17xf32>
    %162 = vector.extract_strided_slice %131 {offsets = [0, 0], sizes = [1, 239], strides = [1, 1]} : vector<1x256xf32> to vector<1x239xf32>
    %163 = tpu.concatenate %161, %162 in 1 : vector<1x17xf32>, vector<1x239xf32> -> vector<1x256xf32>
    %164 = arith.mulf %163, %133 : vector<1x256xf32>
    %c0_43 = arith.constant 0 : index
    %c27 = arith.constant 27 : index
    %165 = vector.load %arg3[%c0_43, %c27] : memref<4x36xf32, #tpu.memory_space<vmem>>, vector<4x1xf32>
    %166 = vector.broadcast %165 : vector<4x1xf32> to vector<4x256xf32>
    %167 = vector.broadcast %164 : vector<1x256xf32> to vector<4x256xf32>
    %168 = arith.mulf %166, %167 : vector<4x256xf32>
    %169 = arith.addf %160, %168 : vector<4x256xf32>
    %c1_44 = arith.constant 1 : index
    %c0_45 = arith.constant 0 : index
    %170 = vector.load %arg2[%c1_44, %c0_45] : memref<9x256xf32, #tpu.memory_space<vmem>>, vector<1x256xf32>
    %171 = vector.extract_strided_slice %62 {offsets = [0, 240], sizes = [1, 16], strides = [1, 1]} : vector<1x256xf32> to vector<1x16xf32>
    %172 = vector.extract_strided_slice %62 {offsets = [0, 0], sizes = [1, 240], strides = [1, 1]} : vector<1x256xf32> to vector<1x240xf32>
    %173 = tpu.concatenate %171, %172 in 1 : vector<1x16xf32>, vector<1x240xf32> -> vector<1x256xf32>
    %174 = arith.mulf %173, %170 : vector<1x256xf32>
    %c0_46 = arith.constant 0 : index
    %c1_47 = arith.constant 1 : index
    %175 = vector.load %arg3[%c0_46, %c1_47] : memref<4x36xf32, #tpu.memory_space<vmem>>, vector<4x1xf32>
    %176 = vector.broadcast %175 : vector<4x1xf32> to vector<4x256xf32>
    %177 = vector.broadcast %174 : vector<1x256xf32> to vector<4x256xf32>
    %178 = arith.mulf %176, %177 : vector<4x256xf32>
    %179 = arith.addf %169, %178 : vector<4x256xf32>
    %180 = vector.extract_strided_slice %85 {offsets = [0, 240], sizes = [1, 16], strides = [1, 1]} : vector<1x256xf32> to vector<1x16xf32>
    %181 = vector.extract_strided_slice %85 {offsets = [0, 0], sizes = [1, 240], strides = [1, 1]} : vector<1x256xf32> to vector<1x240xf32>
    %182 = tpu.concatenate %180, %181 in 1 : vector<1x16xf32>, vector<1x240xf32> -> vector<1x256xf32>
    %183 = arith.mulf %182, %170 : vector<1x256xf32>
    %c0_48 = arith.constant 0 : index
    %c10_49 = arith.constant 10 : index
    %184 = vector.load %arg3[%c0_48, %c10_49] : memref<4x36xf32, #tpu.memory_space<vmem>>, vector<4x1xf32>
    %185 = vector.broadcast %184 : vector<4x1xf32> to vector<4x256xf32>
    %186 = vector.broadcast %183 : vector<1x256xf32> to vector<4x256xf32>
    %187 = arith.mulf %185, %186 : vector<4x256xf32>
    %188 = arith.addf %179, %187 : vector<4x256xf32>
    %189 = vector.extract_strided_slice %108 {offsets = [0, 240], sizes = [1, 16], strides = [1, 1]} : vector<1x256xf32> to vector<1x16xf32>
    %190 = vector.extract_strided_slice %108 {offsets = [0, 0], sizes = [1, 240], strides = [1, 1]} : vector<1x256xf32> to vector<1x240xf32>
    %191 = tpu.concatenate %189, %190 in 1 : vector<1x16xf32>, vector<1x240xf32> -> vector<1x256xf32>
    %192 = arith.mulf %191, %170 : vector<1x256xf32>
    %c0_50 = arith.constant 0 : index
    %c19 = arith.constant 19 : index
    %193 = vector.load %arg3[%c0_50, %c19] : memref<4x36xf32, #tpu.memory_space<vmem>>, vector<4x1xf32>
    %194 = vector.broadcast %193 : vector<4x1xf32> to vector<4x256xf32>
    %195 = vector.broadcast %192 : vector<1x256xf32> to vector<4x256xf32>
    %196 = arith.mulf %194, %195 : vector<4x256xf32>
    %197 = arith.addf %188, %196 : vector<4x256xf32>
    %198 = vector.extract_strided_slice %131 {offsets = [0, 240], sizes = [1, 16], strides = [1, 1]} : vector<1x256xf32> to vector<1x16xf32>
    %199 = vector.extract_strided_slice %131 {offsets = [0, 0], sizes = [1, 240], strides = [1, 1]} : vector<1x256xf32> to vector<1x240xf32>
    %200 = tpu.concatenate %198, %199 in 1 : vector<1x16xf32>, vector<1x240xf32> -> vector<1x256xf32>
    %201 = arith.mulf %200, %170 : vector<1x256xf32>
    %c0_51 = arith.constant 0 : index
    %c28 = arith.constant 28 : index
    %202 = vector.load %arg3[%c0_51, %c28] : memref<4x36xf32, #tpu.memory_space<vmem>>, vector<4x1xf32>
    %203 = vector.broadcast %202 : vector<4x1xf32> to vector<4x256xf32>
    %204 = vector.broadcast %201 : vector<1x256xf32> to vector<4x256xf32>
    %205 = arith.mulf %203, %204 : vector<4x256xf32>
    %206 = arith.addf %197, %205 : vector<4x256xf32>
    %c2_52 = arith.constant 2 : index
    %c0_53 = arith.constant 0 : index
    %207 = vector.load %arg2[%c2_52, %c0_53] : memref<9x256xf32, #tpu.memory_space<vmem>>, vector<1x256xf32>
    %208 = vector.extract_strided_slice %62 {offsets = [0, 241], sizes = [1, 15], strides = [1, 1]} : vector<1x256xf32> to vector<1x15xf32>
    %209 = vector.extract_strided_slice %62 {offsets = [0, 0], sizes = [1, 241], strides = [1, 1]} : vector<1x256xf32> to vector<1x241xf32>
    %210 = tpu.concatenate %208, %209 in 1 : vector<1x15xf32>, vector<1x241xf32> -> vector<1x256xf32>
    %211 = arith.mulf %210, %207 : vector<1x256xf32>
    %c0_54 = arith.constant 0 : index
    %c2_55 = arith.constant 2 : index
    %212 = vector.load %arg3[%c0_54, %c2_55] : memref<4x36xf32, #tpu.memory_space<vmem>>, vector<4x1xf32>
    %213 = vector.broadcast %212 : vector<4x1xf32> to vector<4x256xf32>
    %214 = vector.broadcast %211 : vector<1x256xf32> to vector<4x256xf32>
    %215 = arith.mulf %213, %214 : vector<4x256xf32>
    %216 = arith.addf %206, %215 : vector<4x256xf32>
    %217 = vector.extract_strided_slice %85 {offsets = [0, 241], sizes = [1, 15], strides = [1, 1]} : vector<1x256xf32> to vector<1x15xf32>
    %218 = vector.extract_strided_slice %85 {offsets = [0, 0], sizes = [1, 241], strides = [1, 1]} : vector<1x256xf32> to vector<1x241xf32>
    %219 = tpu.concatenate %217, %218 in 1 : vector<1x15xf32>, vector<1x241xf32> -> vector<1x256xf32>
    %220 = arith.mulf %219, %207 : vector<1x256xf32>
    %c0_56 = arith.constant 0 : index
    %c11_57 = arith.constant 11 : index
    %221 = vector.load %arg3[%c0_56, %c11_57] : memref<4x36xf32, #tpu.memory_space<vmem>>, vector<4x1xf32>
    %222 = vector.broadcast %221 : vector<4x1xf32> to vector<4x256xf32>
    %223 = vector.broadcast %220 : vector<1x256xf32> to vector<4x256xf32>
    %224 = arith.mulf %222, %223 : vector<4x256xf32>
    %225 = arith.addf %216, %224 : vector<4x256xf32>
    %226 = vector.extract_strided_slice %108 {offsets = [0, 241], sizes = [1, 15], strides = [1, 1]} : vector<1x256xf32> to vector<1x15xf32>
    %227 = vector.extract_strided_slice %108 {offsets = [0, 0], sizes = [1, 241], strides = [1, 1]} : vector<1x256xf32> to vector<1x241xf32>
    %228 = tpu.concatenate %226, %227 in 1 : vector<1x15xf32>, vector<1x241xf32> -> vector<1x256xf32>
    %229 = arith.mulf %228, %207 : vector<1x256xf32>
    %c0_58 = arith.constant 0 : index
    %c20 = arith.constant 20 : index
    %230 = vector.load %arg3[%c0_58, %c20] : memref<4x36xf32, #tpu.memory_space<vmem>>, vector<4x1xf32>
    %231 = vector.broadcast %230 : vector<4x1xf32> to vector<4x256xf32>
    %232 = vector.broadcast %229 : vector<1x256xf32> to vector<4x256xf32>
    %233 = arith.mulf %231, %232 : vector<4x256xf32>
    %234 = arith.addf %225, %233 : vector<4x256xf32>
    %235 = vector.extract_strided_slice %131 {offsets = [0, 241], sizes = [1, 15], strides = [1, 1]} : vector<1x256xf32> to vector<1x15xf32>
    %236 = vector.extract_strided_slice %131 {offsets = [0, 0], sizes = [1, 241], strides = [1, 1]} : vector<1x256xf32> to vector<1x241xf32>
    %237 = tpu.concatenate %235, %236 in 1 : vector<1x15xf32>, vector<1x241xf32> -> vector<1x256xf32>
    %238 = arith.mulf %237, %207 : vector<1x256xf32>
    %c0_59 = arith.constant 0 : index
    %c29 = arith.constant 29 : index
    %239 = vector.load %arg3[%c0_59, %c29] : memref<4x36xf32, #tpu.memory_space<vmem>>, vector<4x1xf32>
    %240 = vector.broadcast %239 : vector<4x1xf32> to vector<4x256xf32>
    %241 = vector.broadcast %238 : vector<1x256xf32> to vector<4x256xf32>
    %242 = arith.mulf %240, %241 : vector<4x256xf32>
    %243 = arith.addf %234, %242 : vector<4x256xf32>
    %c3_60 = arith.constant 3 : index
    %c0_61 = arith.constant 0 : index
    %244 = vector.load %arg2[%c3_60, %c0_61] : memref<9x256xf32, #tpu.memory_space<vmem>>, vector<1x256xf32>
    %245 = vector.extract_strided_slice %62 {offsets = [0, 255], sizes = [1, 1], strides = [1, 1]} : vector<1x256xf32> to vector<1x1xf32>
    %246 = vector.extract_strided_slice %62 {offsets = [0, 0], sizes = [1, 255], strides = [1, 1]} : vector<1x256xf32> to vector<1x255xf32>
    %247 = tpu.concatenate %245, %246 in 1 : vector<1x1xf32>, vector<1x255xf32> -> vector<1x256xf32>
    %248 = arith.mulf %247, %244 : vector<1x256xf32>
    %c0_62 = arith.constant 0 : index
    %c3_63 = arith.constant 3 : index
    %249 = vector.load %arg3[%c0_62, %c3_63] : memref<4x36xf32, #tpu.memory_space<vmem>>, vector<4x1xf32>
    %250 = vector.broadcast %249 : vector<4x1xf32> to vector<4x256xf32>
    %251 = vector.broadcast %248 : vector<1x256xf32> to vector<4x256xf32>
    %252 = arith.mulf %250, %251 : vector<4x256xf32>
    %253 = arith.addf %243, %252 : vector<4x256xf32>
    %254 = vector.extract_strided_slice %85 {offsets = [0, 255], sizes = [1, 1], strides = [1, 1]} : vector<1x256xf32> to vector<1x1xf32>
    %255 = vector.extract_strided_slice %85 {offsets = [0, 0], sizes = [1, 255], strides = [1, 1]} : vector<1x256xf32> to vector<1x255xf32>
    %256 = tpu.concatenate %254, %255 in 1 : vector<1x1xf32>, vector<1x255xf32> -> vector<1x256xf32>
    %257 = arith.mulf %256, %244 : vector<1x256xf32>
    %c0_64 = arith.constant 0 : index
    %c12_65 = arith.constant 12 : index
    %258 = vector.load %arg3[%c0_64, %c12_65] : memref<4x36xf32, #tpu.memory_space<vmem>>, vector<4x1xf32>
    %259 = vector.broadcast %258 : vector<4x1xf32> to vector<4x256xf32>
    %260 = vector.broadcast %257 : vector<1x256xf32> to vector<4x256xf32>
    %261 = arith.mulf %259, %260 : vector<4x256xf32>
    %262 = arith.addf %253, %261 : vector<4x256xf32>
    %263 = vector.extract_strided_slice %108 {offsets = [0, 255], sizes = [1, 1], strides = [1, 1]} : vector<1x256xf32> to vector<1x1xf32>
    %264 = vector.extract_strided_slice %108 {offsets = [0, 0], sizes = [1, 255], strides = [1, 1]} : vector<1x256xf32> to vector<1x255xf32>
    %265 = tpu.concatenate %263, %264 in 1 : vector<1x1xf32>, vector<1x255xf32> -> vector<1x256xf32>
    %266 = arith.mulf %265, %244 : vector<1x256xf32>
    %c0_66 = arith.constant 0 : index
    %c21 = arith.constant 21 : index
    %267 = vector.load %arg3[%c0_66, %c21] : memref<4x36xf32, #tpu.memory_space<vmem>>, vector<4x1xf32>
    %268 = vector.broadcast %267 : vector<4x1xf32> to vector<4x256xf32>
    %269 = vector.broadcast %266 : vector<1x256xf32> to vector<4x256xf32>
    %270 = arith.mulf %268, %269 : vector<4x256xf32>
    %271 = arith.addf %262, %270 : vector<4x256xf32>
    %272 = vector.extract_strided_slice %131 {offsets = [0, 255], sizes = [1, 1], strides = [1, 1]} : vector<1x256xf32> to vector<1x1xf32>
    %273 = vector.extract_strided_slice %131 {offsets = [0, 0], sizes = [1, 255], strides = [1, 1]} : vector<1x256xf32> to vector<1x255xf32>
    %274 = tpu.concatenate %272, %273 in 1 : vector<1x1xf32>, vector<1x255xf32> -> vector<1x256xf32>
    %275 = arith.mulf %274, %244 : vector<1x256xf32>
    %c0_67 = arith.constant 0 : index
    %c30 = arith.constant 30 : index
    %276 = vector.load %arg3[%c0_67, %c30] : memref<4x36xf32, #tpu.memory_space<vmem>>, vector<4x1xf32>
    %277 = vector.broadcast %276 : vector<4x1xf32> to vector<4x256xf32>
    %278 = vector.broadcast %275 : vector<1x256xf32> to vector<4x256xf32>
    %279 = arith.mulf %277, %278 : vector<4x256xf32>
    %280 = arith.addf %271, %279 : vector<4x256xf32>
    %c0_68 = arith.constant 0 : index
    %c4_69 = arith.constant 4 : index
    %281 = vector.load %arg3[%c0_68, %c4_69] : memref<4x36xf32, #tpu.memory_space<vmem>>, vector<4x1xf32>
    %282 = vector.broadcast %281 : vector<4x1xf32> to vector<4x256xf32>
    %283 = vector.broadcast %62 : vector<1x256xf32> to vector<4x256xf32>
    %284 = arith.mulf %282, %283 : vector<4x256xf32>
    %285 = arith.addf %280, %284 : vector<4x256xf32>
    %c0_70 = arith.constant 0 : index
    %c13_71 = arith.constant 13 : index
    %286 = vector.load %arg3[%c0_70, %c13_71] : memref<4x36xf32, #tpu.memory_space<vmem>>, vector<4x1xf32>
    %287 = vector.broadcast %286 : vector<4x1xf32> to vector<4x256xf32>
    %288 = vector.broadcast %85 : vector<1x256xf32> to vector<4x256xf32>
    %289 = arith.mulf %287, %288 : vector<4x256xf32>
    %290 = arith.addf %285, %289 : vector<4x256xf32>
    %c0_72 = arith.constant 0 : index
    %c22 = arith.constant 22 : index
    %291 = vector.load %arg3[%c0_72, %c22] : memref<4x36xf32, #tpu.memory_space<vmem>>, vector<4x1xf32>
    %292 = vector.broadcast %291 : vector<4x1xf32> to vector<4x256xf32>
    %293 = vector.broadcast %108 : vector<1x256xf32> to vector<4x256xf32>
    %294 = arith.mulf %292, %293 : vector<4x256xf32>
    %295 = arith.addf %290, %294 : vector<4x256xf32>
    %c0_73 = arith.constant 0 : index
    %c31 = arith.constant 31 : index
    %296 = vector.load %arg3[%c0_73, %c31] : memref<4x36xf32, #tpu.memory_space<vmem>>, vector<4x1xf32>
    %297 = vector.broadcast %296 : vector<4x1xf32> to vector<4x256xf32>
    %298 = vector.broadcast %131 : vector<1x256xf32> to vector<4x256xf32>
    %299 = arith.mulf %297, %298 : vector<4x256xf32>
    %300 = arith.addf %295, %299 : vector<4x256xf32>
    %c5_74 = arith.constant 5 : index
    %c0_75 = arith.constant 0 : index
    %301 = vector.load %arg2[%c5_74, %c0_75] : memref<9x256xf32, #tpu.memory_space<vmem>>, vector<1x256xf32>
    %302 = vector.extract_strided_slice %62 {offsets = [0, 1], sizes = [1, 255], strides = [1, 1]} : vector<1x256xf32> to vector<1x255xf32>
    %303 = vector.extract_strided_slice %62 {offsets = [0, 0], sizes = [1, 1], strides = [1, 1]} : vector<1x256xf32> to vector<1x1xf32>
    %304 = tpu.concatenate %302, %303 in 1 : vector<1x255xf32>, vector<1x1xf32> -> vector<1x256xf32>
    %305 = arith.mulf %304, %301 : vector<1x256xf32>
    %c0_76 = arith.constant 0 : index
    %c5_77 = arith.constant 5 : index
    %306 = vector.load %arg3[%c0_76, %c5_77] : memref<4x36xf32, #tpu.memory_space<vmem>>, vector<4x1xf32>
    %307 = vector.broadcast %306 : vector<4x1xf32> to vector<4x256xf32>
    %308 = vector.broadcast %305 : vector<1x256xf32> to vector<4x256xf32>
    %309 = arith.mulf %307, %308 : vector<4x256xf32>
    %310 = arith.addf %300, %309 : vector<4x256xf32>
    %311 = vector.extract_strided_slice %85 {offsets = [0, 1], sizes = [1, 255], strides = [1, 1]} : vector<1x256xf32> to vector<1x255xf32>
    %312 = vector.extract_strided_slice %85 {offsets = [0, 0], sizes = [1, 1], strides = [1, 1]} : vector<1x256xf32> to vector<1x1xf32>
    %313 = tpu.concatenate %311, %312 in 1 : vector<1x255xf32>, vector<1x1xf32> -> vector<1x256xf32>
    %314 = arith.mulf %313, %301 : vector<1x256xf32>
    %c0_78 = arith.constant 0 : index
    %c14_79 = arith.constant 14 : index
    %315 = vector.load %arg3[%c0_78, %c14_79] : memref<4x36xf32, #tpu.memory_space<vmem>>, vector<4x1xf32>
    %316 = vector.broadcast %315 : vector<4x1xf32> to vector<4x256xf32>
    %317 = vector.broadcast %314 : vector<1x256xf32> to vector<4x256xf32>
    %318 = arith.mulf %316, %317 : vector<4x256xf32>
    %319 = arith.addf %310, %318 : vector<4x256xf32>
    %320 = vector.extract_strided_slice %108 {offsets = [0, 1], sizes = [1, 255], strides = [1, 1]} : vector<1x256xf32> to vector<1x255xf32>
    %321 = vector.extract_strided_slice %108 {offsets = [0, 0], sizes = [1, 1], strides = [1, 1]} : vector<1x256xf32> to vector<1x1xf32>
    %322 = tpu.concatenate %320, %321 in 1 : vector<1x255xf32>, vector<1x1xf32> -> vector<1x256xf32>
    %323 = arith.mulf %322, %301 : vector<1x256xf32>
    %c0_80 = arith.constant 0 : index
    %c23 = arith.constant 23 : index
    %324 = vector.load %arg3[%c0_80, %c23] : memref<4x36xf32, #tpu.memory_space<vmem>>, vector<4x1xf32>
    %325 = vector.broadcast %324 : vector<4x1xf32> to vector<4x256xf32>
    %326 = vector.broadcast %323 : vector<1x256xf32> to vector<4x256xf32>
    %327 = arith.mulf %325, %326 : vector<4x256xf32>
    %328 = arith.addf %319, %327 : vector<4x256xf32>
    %329 = vector.extract_strided_slice %131 {offsets = [0, 1], sizes = [1, 255], strides = [1, 1]} : vector<1x256xf32> to vector<1x255xf32>
    %330 = vector.extract_strided_slice %131 {offsets = [0, 0], sizes = [1, 1], strides = [1, 1]} : vector<1x256xf32> to vector<1x1xf32>
    %331 = tpu.concatenate %329, %330 in 1 : vector<1x255xf32>, vector<1x1xf32> -> vector<1x256xf32>
    %332 = arith.mulf %331, %301 : vector<1x256xf32>
    %c0_81 = arith.constant 0 : index
    %c32 = arith.constant 32 : index
    %333 = vector.load %arg3[%c0_81, %c32] : memref<4x36xf32, #tpu.memory_space<vmem>>, vector<4x1xf32>
    %334 = vector.broadcast %333 : vector<4x1xf32> to vector<4x256xf32>
    %335 = vector.broadcast %332 : vector<1x256xf32> to vector<4x256xf32>
    %336 = arith.mulf %334, %335 : vector<4x256xf32>
    %337 = arith.addf %328, %336 : vector<4x256xf32>
    %c6_82 = arith.constant 6 : index
    %c0_83 = arith.constant 0 : index
    %338 = vector.load %arg2[%c6_82, %c0_83] : memref<9x256xf32, #tpu.memory_space<vmem>>, vector<1x256xf32>
    %339 = vector.extract_strided_slice %62 {offsets = [0, 15], sizes = [1, 241], strides = [1, 1]} : vector<1x256xf32> to vector<1x241xf32>
    %340 = vector.extract_strided_slice %62 {offsets = [0, 0], sizes = [1, 15], strides = [1, 1]} : vector<1x256xf32> to vector<1x15xf32>
    %341 = tpu.concatenate %339, %340 in 1 : vector<1x241xf32>, vector<1x15xf32> -> vector<1x256xf32>
    %342 = arith.mulf %341, %338 : vector<1x256xf32>
    %c0_84 = arith.constant 0 : index
    %c6_85 = arith.constant 6 : index
    %343 = vector.load %arg3[%c0_84, %c6_85] : memref<4x36xf32, #tpu.memory_space<vmem>>, vector<4x1xf32>
    %344 = vector.broadcast %343 : vector<4x1xf32> to vector<4x256xf32>
    %345 = vector.broadcast %342 : vector<1x256xf32> to vector<4x256xf32>
    %346 = arith.mulf %344, %345 : vector<4x256xf32>
    %347 = arith.addf %337, %346 : vector<4x256xf32>
    %348 = vector.extract_strided_slice %85 {offsets = [0, 15], sizes = [1, 241], strides = [1, 1]} : vector<1x256xf32> to vector<1x241xf32>
    %349 = vector.extract_strided_slice %85 {offsets = [0, 0], sizes = [1, 15], strides = [1, 1]} : vector<1x256xf32> to vector<1x15xf32>
    %350 = tpu.concatenate %348, %349 in 1 : vector<1x241xf32>, vector<1x15xf32> -> vector<1x256xf32>
    %351 = arith.mulf %350, %338 : vector<1x256xf32>
    %c0_86 = arith.constant 0 : index
    %c15_87 = arith.constant 15 : index
    %352 = vector.load %arg3[%c0_86, %c15_87] : memref<4x36xf32, #tpu.memory_space<vmem>>, vector<4x1xf32>
    %353 = vector.broadcast %352 : vector<4x1xf32> to vector<4x256xf32>
    %354 = vector.broadcast %351 : vector<1x256xf32> to vector<4x256xf32>
    %355 = arith.mulf %353, %354 : vector<4x256xf32>
    %356 = arith.addf %347, %355 : vector<4x256xf32>
    %357 = vector.extract_strided_slice %108 {offsets = [0, 15], sizes = [1, 241], strides = [1, 1]} : vector<1x256xf32> to vector<1x241xf32>
    %358 = vector.extract_strided_slice %108 {offsets = [0, 0], sizes = [1, 15], strides = [1, 1]} : vector<1x256xf32> to vector<1x15xf32>
    %359 = tpu.concatenate %357, %358 in 1 : vector<1x241xf32>, vector<1x15xf32> -> vector<1x256xf32>
    %360 = arith.mulf %359, %338 : vector<1x256xf32>
    %c0_88 = arith.constant 0 : index
    %c24 = arith.constant 24 : index
    %361 = vector.load %arg3[%c0_88, %c24] : memref<4x36xf32, #tpu.memory_space<vmem>>, vector<4x1xf32>
    %362 = vector.broadcast %361 : vector<4x1xf32> to vector<4x256xf32>
    %363 = vector.broadcast %360 : vector<1x256xf32> to vector<4x256xf32>
    %364 = arith.mulf %362, %363 : vector<4x256xf32>
    %365 = arith.addf %356, %364 : vector<4x256xf32>
    %366 = vector.extract_strided_slice %131 {offsets = [0, 15], sizes = [1, 241], strides = [1, 1]} : vector<1x256xf32> to vector<1x241xf32>
    %367 = vector.extract_strided_slice %131 {offsets = [0, 0], sizes = [1, 15], strides = [1, 1]} : vector<1x256xf32> to vector<1x15xf32>
    %368 = tpu.concatenate %366, %367 in 1 : vector<1x241xf32>, vector<1x15xf32> -> vector<1x256xf32>
    %369 = arith.mulf %368, %338 : vector<1x256xf32>
    %c0_89 = arith.constant 0 : index
    %c33 = arith.constant 33 : index
    %370 = vector.load %arg3[%c0_89, %c33] : memref<4x36xf32, #tpu.memory_space<vmem>>, vector<4x1xf32>
    %371 = vector.broadcast %370 : vector<4x1xf32> to vector<4x256xf32>
    %372 = vector.broadcast %369 : vector<1x256xf32> to vector<4x256xf32>
    %373 = arith.mulf %371, %372 : vector<4x256xf32>
    %374 = arith.addf %365, %373 : vector<4x256xf32>
    %c7_90 = arith.constant 7 : index
    %c0_91 = arith.constant 0 : index
    %375 = vector.load %arg2[%c7_90, %c0_91] : memref<9x256xf32, #tpu.memory_space<vmem>>, vector<1x256xf32>
    %376 = vector.extract_strided_slice %62 {offsets = [0, 16], sizes = [1, 240], strides = [1, 1]} : vector<1x256xf32> to vector<1x240xf32>
    %377 = vector.extract_strided_slice %62 {offsets = [0, 0], sizes = [1, 16], strides = [1, 1]} : vector<1x256xf32> to vector<1x16xf32>
    %378 = tpu.concatenate %376, %377 in 1 : vector<1x240xf32>, vector<1x16xf32> -> vector<1x256xf32>
    %379 = arith.mulf %378, %375 : vector<1x256xf32>
    %c0_92 = arith.constant 0 : index
    %c7_93 = arith.constant 7 : index
    %380 = vector.load %arg3[%c0_92, %c7_93] : memref<4x36xf32, #tpu.memory_space<vmem>>, vector<4x1xf32>
    %381 = vector.broadcast %380 : vector<4x1xf32> to vector<4x256xf32>
    %382 = vector.broadcast %379 : vector<1x256xf32> to vector<4x256xf32>
    %383 = arith.mulf %381, %382 : vector<4x256xf32>
    %384 = arith.addf %374, %383 : vector<4x256xf32>
    %385 = vector.extract_strided_slice %85 {offsets = [0, 16], sizes = [1, 240], strides = [1, 1]} : vector<1x256xf32> to vector<1x240xf32>
    %386 = vector.extract_strided_slice %85 {offsets = [0, 0], sizes = [1, 16], strides = [1, 1]} : vector<1x256xf32> to vector<1x16xf32>
    %387 = tpu.concatenate %385, %386 in 1 : vector<1x240xf32>, vector<1x16xf32> -> vector<1x256xf32>
    %388 = arith.mulf %387, %375 : vector<1x256xf32>
    %c0_94 = arith.constant 0 : index
    %c16 = arith.constant 16 : index
    %389 = vector.load %arg3[%c0_94, %c16] : memref<4x36xf32, #tpu.memory_space<vmem>>, vector<4x1xf32>
    %390 = vector.broadcast %389 : vector<4x1xf32> to vector<4x256xf32>
    %391 = vector.broadcast %388 : vector<1x256xf32> to vector<4x256xf32>
    %392 = arith.mulf %390, %391 : vector<4x256xf32>
    %393 = arith.addf %384, %392 : vector<4x256xf32>
    %394 = vector.extract_strided_slice %108 {offsets = [0, 16], sizes = [1, 240], strides = [1, 1]} : vector<1x256xf32> to vector<1x240xf32>
    %395 = vector.extract_strided_slice %108 {offsets = [0, 0], sizes = [1, 16], strides = [1, 1]} : vector<1x256xf32> to vector<1x16xf32>
    %396 = tpu.concatenate %394, %395 in 1 : vector<1x240xf32>, vector<1x16xf32> -> vector<1x256xf32>
    %397 = arith.mulf %396, %375 : vector<1x256xf32>
    %c0_95 = arith.constant 0 : index
    %c25 = arith.constant 25 : index
    %398 = vector.load %arg3[%c0_95, %c25] : memref<4x36xf32, #tpu.memory_space<vmem>>, vector<4x1xf32>
    %399 = vector.broadcast %398 : vector<4x1xf32> to vector<4x256xf32>
    %400 = vector.broadcast %397 : vector<1x256xf32> to vector<4x256xf32>
    %401 = arith.mulf %399, %400 : vector<4x256xf32>
    %402 = arith.addf %393, %401 : vector<4x256xf32>
    %403 = vector.extract_strided_slice %131 {offsets = [0, 16], sizes = [1, 240], strides = [1, 1]} : vector<1x256xf32> to vector<1x240xf32>
    %404 = vector.extract_strided_slice %131 {offsets = [0, 0], sizes = [1, 16], strides = [1, 1]} : vector<1x256xf32> to vector<1x16xf32>
    %405 = tpu.concatenate %403, %404 in 1 : vector<1x240xf32>, vector<1x16xf32> -> vector<1x256xf32>
    %406 = arith.mulf %405, %375 : vector<1x256xf32>
    %c0_96 = arith.constant 0 : index
    %c34 = arith.constant 34 : index
    %407 = vector.load %arg3[%c0_96, %c34] : memref<4x36xf32, #tpu.memory_space<vmem>>, vector<4x1xf32>
    %408 = vector.broadcast %407 : vector<4x1xf32> to vector<4x256xf32>
    %409 = vector.broadcast %406 : vector<1x256xf32> to vector<4x256xf32>
    %410 = arith.mulf %408, %409 : vector<4x256xf32>
    %411 = arith.addf %402, %410 : vector<4x256xf32>
    %c8_97 = arith.constant 8 : index
    %c0_98 = arith.constant 0 : index
    %412 = vector.load %arg2[%c8_97, %c0_98] : memref<9x256xf32, #tpu.memory_space<vmem>>, vector<1x256xf32>
    %413 = vector.extract_strided_slice %62 {offsets = [0, 17], sizes = [1, 239], strides = [1, 1]} : vector<1x256xf32> to vector<1x239xf32>
    %414 = vector.extract_strided_slice %62 {offsets = [0, 0], sizes = [1, 17], strides = [1, 1]} : vector<1x256xf32> to vector<1x17xf32>
    %415 = tpu.concatenate %413, %414 in 1 : vector<1x239xf32>, vector<1x17xf32> -> vector<1x256xf32>
    %416 = arith.mulf %415, %412 : vector<1x256xf32>
    %c0_99 = arith.constant 0 : index
    %c8_100 = arith.constant 8 : index
    %417 = vector.load %arg3[%c0_99, %c8_100] : memref<4x36xf32, #tpu.memory_space<vmem>>, vector<4x1xf32>
    %418 = vector.broadcast %417 : vector<4x1xf32> to vector<4x256xf32>
    %419 = vector.broadcast %416 : vector<1x256xf32> to vector<4x256xf32>
    %420 = arith.mulf %418, %419 : vector<4x256xf32>
    %421 = arith.addf %411, %420 : vector<4x256xf32>
    %422 = vector.extract_strided_slice %85 {offsets = [0, 17], sizes = [1, 239], strides = [1, 1]} : vector<1x256xf32> to vector<1x239xf32>
    %423 = vector.extract_strided_slice %85 {offsets = [0, 0], sizes = [1, 17], strides = [1, 1]} : vector<1x256xf32> to vector<1x17xf32>
    %424 = tpu.concatenate %422, %423 in 1 : vector<1x239xf32>, vector<1x17xf32> -> vector<1x256xf32>
    %425 = arith.mulf %424, %412 : vector<1x256xf32>
    %c0_101 = arith.constant 0 : index
    %c17 = arith.constant 17 : index
    %426 = vector.load %arg3[%c0_101, %c17] : memref<4x36xf32, #tpu.memory_space<vmem>>, vector<4x1xf32>
    %427 = vector.broadcast %426 : vector<4x1xf32> to vector<4x256xf32>
    %428 = vector.broadcast %425 : vector<1x256xf32> to vector<4x256xf32>
    %429 = arith.mulf %427, %428 : vector<4x256xf32>
    %430 = arith.addf %421, %429 : vector<4x256xf32>
    %431 = vector.extract_strided_slice %108 {offsets = [0, 17], sizes = [1, 239], strides = [1, 1]} : vector<1x256xf32> to vector<1x239xf32>
    %432 = vector.extract_strided_slice %108 {offsets = [0, 0], sizes = [1, 17], strides = [1, 1]} : vector<1x256xf32> to vector<1x17xf32>
    %433 = tpu.concatenate %431, %432 in 1 : vector<1x239xf32>, vector<1x17xf32> -> vector<1x256xf32>
    %434 = arith.mulf %433, %412 : vector<1x256xf32>
    %c0_102 = arith.constant 0 : index
    %c26 = arith.constant 26 : index
    %435 = vector.load %arg3[%c0_102, %c26] : memref<4x36xf32, #tpu.memory_space<vmem>>, vector<4x1xf32>
    %436 = vector.broadcast %435 : vector<4x1xf32> to vector<4x256xf32>
    %437 = vector.broadcast %434 : vector<1x256xf32> to vector<4x256xf32>
    %438 = arith.mulf %436, %437 : vector<4x256xf32>
    %439 = arith.addf %430, %438 : vector<4x256xf32>
    %440 = vector.extract_strided_slice %131 {offsets = [0, 17], sizes = [1, 239], strides = [1, 1]} : vector<1x256xf32> to vector<1x239xf32>
    %441 = vector.extract_strided_slice %131 {offsets = [0, 0], sizes = [1, 17], strides = [1, 1]} : vector<1x256xf32> to vector<1x17xf32>
    %442 = tpu.concatenate %440, %441 in 1 : vector<1x239xf32>, vector<1x17xf32> -> vector<1x256xf32>
    %443 = arith.mulf %442, %412 : vector<1x256xf32>
    %c0_103 = arith.constant 0 : index
    %c35 = arith.constant 35 : index
    %444 = vector.load %arg3[%c0_103, %c35] : memref<4x36xf32, #tpu.memory_space<vmem>>, vector<4x1xf32>
    %445 = vector.broadcast %444 : vector<4x1xf32> to vector<4x256xf32>
    %446 = vector.broadcast %443 : vector<1x256xf32> to vector<4x256xf32>
    %447 = arith.mulf %445, %446 : vector<4x256xf32>
    %448 = arith.addf %439, %447 : vector<4x256xf32>
    %c0_104 = arith.constant 0 : index
    %449 = memref.load %arg9[%c0_104] : memref<2xf32, #tpu.memory_space<smem>>
    %c1_105 = arith.constant 1 : index
    %450 = memref.load %arg9[%c1_105] : memref<2xf32, #tpu.memory_space<smem>>
    %c0_106 = arith.constant 0 : index
    %c0_107 = arith.constant 0 : index
    %c0_108 = arith.constant 0 : index
    %451 = vector.load %arg1[%c0_106, %c0_107, %c0_108] : memref<1x4x256xf32, #tpu.memory_space<vmem>>, vector<1x4x256xf32>
    %452 = vector.shape_cast %451 : vector<1x4x256xf32> to vector<4x256xf32>
    %453 = vector.broadcast %449 : f32 to vector<4x256xf32>
    %454 = arith.mulf %453, %452 : vector<4x256xf32>
    %455 = vector.broadcast %450 : f32 to vector<4x256xf32>
    %456 = arith.mulf %455, %448 : vector<4x256xf32>
    %457 = arith.addf %454, %456 : vector<4x256xf32>
    %c0_109 = arith.constant 0 : index
    %c0_110 = arith.constant 0 : index
    %c0_111 = arith.constant 0 : index
    %458 = vector.load %arg10[%c0_109, %c0_110, %c0_111] : memref<1x4x256xf32, #tpu.memory_space<vmem>>, vector<1x4x256xf32>
    %459 = vector.shape_cast %458 : vector<1x4x256xf32> to vector<4x256xf32>
    %460 = vector.shape_cast %457 : vector<4x256xf32> to vector<1x4x256xf32>
    tpu.vector_store %arg10[%c0_109, %c0_110, %c0_111], %460 {strides = array<i32>} : memref<1x4x256xf32, #tpu.memory_space<vmem>>, vector<1x4x256xf32>,
    return
  }
  func.func @transform_0(%arg0: i32) -> (i32, i32, i32) {
    %c0_i32 = arith.constant 0 : i32
    %c0_i32_0 = arith.constant 0 : i32
    %c0_i32_1 = arith.constant 0 : i32
    return %arg0, %c0_i32, %c0_i32_0 : i32, i32, i32
  }
  func.func @transform_1(%arg0: i32) -> (i32, i32) {
    %c0_i32 = arith.constant 0 : i32
    %c0_i32_0 = arith.constant 0 : i32
    %c0_i32_1 = arith.constant 0 : i32
    return %c0_i32, %c0_i32_0 : i32, i32
  }
  func.func @transform_2(%arg0: i32) -> (i32, i32) {
    %c0_i32 = arith.constant 0 : i32
    %c0_i32_0 = arith.constant 0 : i32
    %c0_i32_1 = arith.constant 0 : i32
    return %c0_i32, %c0_i32_0 : i32, i32
  }
  func.func @transform_3(%arg0: i32) -> i32 {
    %c0_i32 = arith.constant 0 : i32
    %c0_i32_0 = arith.constant 0 : i32
    return %c0_i32 : i32
  }
  func.func @transform_4(%arg0: i32) -> i32 {
    %c0_i32 = arith.constant 0 : i32
    %c0_i32_0 = arith.constant 0 : i32
    return %c0_i32 : i32
  }
  func.func @transform_5(%arg0: i32) -> i32 {
    %c0_i32 = arith.constant 0 : i32
    %c0_i32_0 = arith.constant 0 : i32
    return %c0_i32 : i32
  }
  func.func @transform_6(%arg0: i32) -> i32 {
    %c0_i32 = arith.constant 0 : i32
    %c0_i32_0 = arith.constant 0 : i32
    return %c0_i32 : i32
  }
  func.func @transform_7(%arg0: i32) -> i32 {
    %c0_i32 = arith.constant 0 : i32
    %c0_i32_0 = arith.constant 0 : i32
    return %c0_i32 : i32
  }
  func.func @transform_8(%arg0: i32) -> i32 {
    %c0_i32 = arith.constant 0 : i32
    %c0_i32_0 = arith.constant 0 : i32
    return %c0_i32 : i32
  }
  func.func @transform_9(%arg0: i32) -> (i32, i32, i32) {
    %c0_i32 = arith.constant 0 : i32
    %c0_i32_0 = arith.constant 0 : i32
    %c0_i32_1 = arith.constant 0 : i32
    return %arg0, %c0_i32, %c0_i32_0 : i32, i32, i32
  }
}

</mosaic_0001>

<bundles_post_ra>
// kernel: tpu_custom_call.1
= control target key start
LH: loop header
LB: loop body
LE: loop exit
PB: predicated region body
PF: predicated region fallthrough
CT: control target
= control target key end

     0   :  { %s2799_s0 = inlined_call_operand.hbm [shape: f32[2,4,256], index: 0, kind: input, shape index: {}]   ;;  %s2800_s1 = inlined_call_operand.hbm [shape: f32[9,256], index: 1, kind: input, shape index: {}]   ;;  %s2801_s2 = inlined_call_operand.hbm [shape: f32[4,36], index: 2, kind: input, shape index: {}]   ;;  %s2802_s3 = inlined_call_operand.vmem [shape: f32[4], index: 3, kind: input, shape index: {}]   ;;  %s2803_s4 = inlined_call_operand.vmem [shape: f32[4], index: 4, kind: input, shape index: {}]   ;;  %s2804_s5 = inlined_call_operand.vmem [shape: f32[16], index: 5, kind: input, shape index: {}]   ;;  %s2805_s6 = inlined_call_operand.vmem [shape: f32[4], index: 6, kind: input, shape index: {}]   ;;  %s2806_s7 = inlined_call_operand.vmem [shape: f32[4], index: 7, kind: input, shape index: {}]   ;;  %s2807_s8 = inlined_call_operand.vmem [shape: f32[2], index: 8, kind: input, shape index: {}]   ;;  %s2808_s9 = inlined_call_operand.hbm [shape: f32[2,4,256], index: 9, kind: output, shape index: {}]  }
   0x1   :  { %2809 = sst [smem:[#allocation26_spill]] %s2800_s1 }
   0x2   :  { %2810 = sst [smem:[#allocation27_spill]] %s2801_s2 }
   0x3   :  { %2811 = sst [smem:[#allocation28_spill]] %s2802_s3 }
   0x4   :  { %2812 = sst [smem:[#allocation29_spill]] %s2803_s4 }
   0x5   :  { %14 = vsyncpa [#allocation3], 0 }
   0x6   :  { %16 = vsyncpa [#allocation3 + $0x1], 0 }
   0x7   :  { %17 = vsyncpa [#allocation7], 0 }
   0x8   :  { %18 = vsyncpa [#allocation5], 0 }
   0x9   :  { %19 = vsyncpa [#allocation11], 0 }
   0xa   :  { %20 = vsyncpa [#allocation14], 0 }
   0xb   :  { %21 = vsyncpa [#allocation17], 0 }
   0xc   :  { %22 = vsyncpa [#allocation4], 0 }
   0xd   :  { %24 = vsyncpa [#allocation4 + $0x1], 0  ;;  %s2199_s30 = smov 0   ;;  %s2201_s10 = smov 0  }
   0xe   :  { %s2203_s11 = smov 0   ;;  %s2205_s12 = smov 0  }
   0xf LB: > { %s2813_s1 = sld [smem:[#allocation26_spill]]  ;;  %s2223_s16 = sadd.s32 4294967295, %s2093_s12   ;;  %s2093_s12 = sphi %s2205_s12, %s2828_s12   ;;  %s2089_s11 = sphi %s2203_s11, %s2827_s11   ;;  %s2085_s10 = sphi %s2201_s10, %s2826_s10   ;;  %s2081_s30 = sphi %s2199_s30, %s2825_s30  }
  0x10   : > { %p1554_p0 = scmp.ge.s32.totalorder %s2093_s12, 1  ;;  %p51_p1 = scmp.eq.s32.totalorder %s2223_s16, 0 }
  0x11   : > { %p255_p2 = scmp.lt.s32.totalorder %s2093_s12, 3  ;;  %s2095_s18 = smov [#allocation6]  }
  0x12   : > { %s268_s19 = sshll.u32 %s2095_s18, 4  ;;  %s2815_s4 = sld [smem:[#allocation29_spill]]  ;;  %s269_s19 = int_to_ptr.vmem [resolvable:$true] %s268_s19 }
  0x13   : > { %p2228_p3 = pnand %p1554_p0, %p255_p2  ;;  %s323_s26 = sshll.u32 %s2805_s6, 4  ;;  %s324_s26 = int_to_ptr.vmem [resolvable:$true] %s323_s26 }
  0x14   : > { %s2096_s27 = smov 256   ;;  %s2097_s28 = smov 16  }
  0x15   : > { %s266_s15 = sshll.u32 %s2813_s1, 4  ;;  %p1652_p4 = pneg %p2228_p3  ;;  %s267_s15 = int_to_ptr.hbm [resolvable:$true] %s266_s15 }
  0x16   : > { %s2098_s29 = smov [#allocation10]   ;;  %s2817_s2 = sld [smem:[#allocation27_spill]] }
  0x17   : > { %p2240_p6 = pnand %p1652_p4, %p51_p1  ;;  %s2099_s20 = smov [#allocation13]  }
  0x18   : > { %s303_s22 = sshll.u32 %s2815_s4, 4  ;;  %s2100_s21 = smov [#allocation8]   ;;  %s304_s22 = int_to_ptr.vmem [resolvable:$true] %s303_s22 }
  0x19   : > { %1655 = dma.hbm_to_vmem [thread:$0]  (!%p2240_p6), %s267_s15, 512, %s269_s19, [#allocation7], %s2096_s27, %s2096_s27, %s2097_s28  }
  0x1a   : > { %1664 = dma.vmem_to_smem (!%p2240_p6), %s304_s22, 16, %s2098_s29, [#allocation11]  }
  0x1b   : > { %1670 = dma.vmem_to_smem (!%p2240_p6), %s324_s26, 16, %s2099_s20, [#allocation14]  }
  0x1c   : > { %s281_s18 = sshll.u32 %s2817_s2, 4  ;;  %s283_s24 = sshll.u32 %s2100_s21, 4  ;;  %s282_s18 = int_to_ptr.hbm [resolvable:$true] %s281_s18  ;;  %s284_s24 = int_to_ptr.vmem [resolvable:$true] %s283_s24 }
  0x1d   : > { %s2818_s3 = sld [smem:[#allocation28_spill]]  ;;  %s313_s22 = sshll.u32 %s2804_s5, 4  ;;  %s314_s22 = int_to_ptr.vmem [resolvable:$true] %s313_s22 }
  0x1e   : > { %1658 = dma.hbm_to_vmem [thread:$0]  (!%p2240_p6), %s282_s18, 64, %s284_s24, [#allocation7]  }
  0x1f   : > { %s2101_s26 = smov [#allocation9]   ;;  %s2102_s1 = smov [#allocation12]  }
  0x20   : > { %1667 = dma.vmem_to_smem (!%p2240_p6), %s314_s22, 16, %s2102_s1, [#allocation11]  }
  0x21   : > { %s333_s29 = sshll.u32 %s2806_s7, 4  ;;  %s343_s18 = sshll.u32 %s2807_s8, 4  ;;  %s334_s29 = int_to_ptr.vmem [resolvable:$true] %s333_s29  ;;  %s344_s18 = int_to_ptr.vmem [resolvable:$true] %s343_s18 }
  0x22   : > { %s2104_s20 = smov [#allocation16]   ;;  %s1553_s21 = sadd.s32 4294967294, %s2093_s12  }
  0x23   : > { %s293_s4 = sshll.u32 %s2818_s3, 4  ;;  %s2280_s24 = sadd.s32 1, %s2093_s12   ;;  %s294_s4 = int_to_ptr.vmem [resolvable:$true] %s293_s4 }
  0x24   : > { %1661 = dma.vmem_to_smem (!%p2240_p6), %s294_s4, 16, %s2101_s26, [#allocation5]  }
  0x25   : > { %s2103_s4 = smov [#allocation15]   ;;  %s34_s25 = ssub.s32 %s2093_s12, %s2280_s24 }
  0x26   : > { %1673 = dma.vmem_to_smem (!%p2240_p6), %s334_s29, 16, %s2103_s4, [#allocation14]  }
  0x27   : > { %1676 = dma.vmem_to_smem (!%p2240_p6), %s344_s18, 16, %s2104_s20, [#allocation17]  }
  0x28   : > { %s37_s15 = sadd.s32 1, %s2089_s11  ;;  %p35_p7 = scmp.eq.s32.totalorder %s34_s25, 0 }
  0x29   : > { %p44_p8 = scmp.ne.s32.totalorder %s2089_s11, %s2085_s10  ;;  %p45_p9 = scmp.eq.s32.totalorder %s2093_s12, 0 }
  0x2a   : > { %p50_p10 = scmp.ne.s32.totalorder %s2085_s10, %s2081_s30  ;;  %p242_p13 = scmp.eq.s32.totalorder %s2223_s16, 1 }
  0x2b   : > { %s2291_s19 = scalar_select %p35_p7, %s2089_s11, %s37_s15  }
  0x2c   : > { %p2293_p11 = por %p45_p9, %p44_p8  ;;  %p2299_p12 = por %p51_p1, %p50_p10 }
  0x2d   : > { %p248_p0 = scmp.eq.s32.totalorder %s1553_s21, 1  ;;  %p1693_p2 = scmp.lt.s32.totalorder %s2093_s12, 2 }
  0x2e   : > { %s354_s26 = sand.u32 1, %s2089_s11   ;;  %p2306_p4 = por %p242_p13, %p44_p8 }
  0x2f   : > { %p2310_p6 = por %p248_p0, %p50_p10  ;;  %s1564_s28 = sshll.u32 %s354_s26, 3 }
  0x30   : > { %s1614_s29 = sshll.u32 %s2093_s12, 3  ;;  %s358_s4 = scalar_lea.vmem [#allocation2], %s1564_s28 }
  0x31   : > { %s363_s18 = scalar_lea.hbm %s2799_s0, %s1614_s29  ;;  %s367_s20 = sshll.u32 %s358_s4, 4  ;;  %s368_s20 = int_to_ptr.vmem [resolvable:$true] %s367_s20 }
  0x32   : > { %s365_s25 = sshll.u32 %s363_s18, 4  ;;  %p2320_p7 = pnand %p1693_p2, %p2293_p11  ;;  %s366_s25 = int_to_ptr.hbm [resolvable:$true] %s365_s25 }
  0x33   : > { %s355_s15 = scalar_lea.sflag [#allocation3], %s354_s26  ;;  %s1977_s2 = sshra.s32 %s366_s25, 4  ;;  %s1978_s2 = int_to_ptr.hbm [resolvable:$true] %s1977_s2 }
  0x34   : > { %s1979_s3 = scalar_lea.hbm %s1978_s2, 8  ;;  %p1981_p9 = pneg %p2320_p7 }
  0x35   : > { %p1980_p8 = scmp.ne.s32.totalorder %s1978_s2, %s1979_s3  ;;  %s1984_s13 = scalar_lea.hbm %s2799_s0, 16 }
  0x36   : > { %p1985_p11 = scmp.lt.s32.totalorder %s1978_s2, %s2799_s0  ;;  %p1986_p0 = scmp.lt.s32.totalorder %s1984_s13, %s1979_s3 }
  0x37   : > { %p1982_p10 = pnand %p1981_p9, %p1980_p8 }
  0x38   : > { %p1987_p2 = por %p1986_p0, %p1985_p11 }
  0x39   : > { %p1983_p13 = pneg %p1982_p10 }
  0x3b   : > { %p1988_p5 = pnand %p1987_p2, %p1983_p13 }
  0x3d   : > { %1991 = shalt.err (!%p1988_p5)
}
  0x3e   : > { %1680 = dma.hbm_to_vmem [thread:$0]  (!%p2320_p7), %s366_s25, 128, %s368_s20, %s355_s15  }
  0x3f   : > { %376 = sbr.rel (%p2228_p3) target bundleno = 514 (0x202), region = 56  ;;  %s2337_s26 = sand.u32 (!%p2228_p3), 1, %s2085_s10  }
  0x40   : > { %s1568_s18 = sshll.u32 (!%p2228_p3), %s2337_s26, 3  ;;  %s379_s4 = scalar_lea.sflag (!%p2228_p3), [#allocation3], %s2337_s26 }
  0x41   : > { %s2343_s2 = scalar_lea.vmem (!%p2228_p3), [#allocation2], %s1568_s18 }
  0x44   : > { %2052 = dma.done.wait (%p2299_p12), %s379_s4, 128  }
  0x45   : > { %2054 = vsyncadd (%p2299_p12), %s379_s4, 4294967168 }
  0x46   : > { %2056 = dma.done.wait (%p51_p1), [#allocation7], 576  }
  0x47   : > { %2058 = vsyncadd (%p51_p1), [#allocation7], 4294966720 }
  0x48   : > { %2060 = dma.done.wait (%p51_p1), [#allocation5], 16  }
  0x49   : > { %2062 = vsyncadd (%p51_p1), [#allocation5], 4294967280 }
  0x4a   : > { %2064 = dma.done.wait (%p51_p1), [#allocation11], 32  }
  0x4b   : > { %2066 = vsyncadd (%p51_p1), [#allocation11], 4294967264 }
  0x4c   : > { %2068 = dma.done.wait (%p51_p1), [#allocation14], 32  }
  0x4d   : > { %2070 = vsyncadd (%p51_p1), [#allocation14], 4294967264 }
  0x4e   : > { %2072 = dma.done.wait (%p51_p1), [#allocation17], 16  }
  0x4f   : > { %2074 = vsyncadd (%p51_p1), [#allocation17], 4294967280 }
  0x50   : > { %428 = sfence }
  0x51   : > { %v2369_v0 = vld [vmem:[#allocation8] sm:$0xf]  ;;  %s460_s3 = sld [smem:[#allocation9]]  ;;  %v2105_v1 = vmov 0   ;;  %v2106_v2 = vmov 9   ;;  %v2107_v15 = vmov 18  }
  0x52   : > { %1789 = vset.pattern.permute.xlu1 %v2105_v1  ;;  %1790 = vset.pattern.permute.xlu2 %v2106_v2  ;;  %s463_s17 = sld [smem:[#allocation10]]  ;;  %v459_v3 = vld [vmem:[%s2343_s2] ss:$4 sm:$0x3]  ;;  %v2108_v37 = vmov 27   ;;  %vm591_vm0 = vcmask 138240  }
  0x53   : > { %606 = vperm.xlu1 %1789, %v2369_v0   ;;  %630 = vperm.xlu2 %1790, %v2369_v0   ;;  %s1579_s23 = sld [smem:[#allocation9 + $0x1]]  ;;  %v1578_v5 = vld [vmem:[%s2343_s2 + $0x1] ss:$4 sm:$0x3]  ;;  %vm694_vm1 = vcmask 130048   ;;  %vm786_vm2 = vcmask 121856  }
  0x54   : > { %s1580_s20 = sld [smem:[#allocation10 + $0x1]]  ;;  %v1581_v9 = vld [vmem:[%s2343_s2 + $0x2] ss:$4 sm:$0x3]  ;;  %vm878_vm3 = vcmask 7168   ;;  %vm1009_vm4 = vcmask 1039360  }
  0x55   : > { %s1582_s25 = sld [smem:[#allocation9 + $0x2]]  ;;  %v1584_v14 = vld [vmem:[%s2343_s2 + $0x3] ss:$4 sm:$0x3]  ;;  %vm1101_vm5 = vcmask 924672   ;;  %vm1193_vm6 = vcmask 916480  }
  0x56   : > { %s1583_s21 = sld [smem:[#allocation10 + $0x2]]  ;;  %vm1285_vm7 = vcmask 908288   ;;  %vm1382_vm8 = vcmask 1043456  }
  0x57   : > { %v461_v4 = vstv %s460_s3  ;;  %s1585_s15 = sld [smem:[#allocation9 + $0x3]] }
  0x58   : > { %v462_v6 = vmul.f32 %v461_v4, %v459_v3  ;;  %v464_v7 = vstv %s463_s17  ;;  %s1586_s28 = sld [smem:[#allocation10 + $0x3]] }
  0x59   : > { %v470_v8 = vstv %s1579_s23  ;;  %s1590_s29 = sld [smem:[#allocation12 + $0x4]] }
  0x5a   : > { %v465_v10 = vadd.f32 %v464_v7, %v462_v6  ;;  %v471_v11 = vmul.f32 %v1578_v5, %v470_v8  ;;  %v473_v12 = vstv %s1580_s20  ;;  %s1591_s13 = sld [smem:[#allocation12 + $0x5]] }
  0x5b   : > { %v479_v13 = vstv %s1582_s25  ;;  %s1592_s14 = sld [smem:[#allocation12 + $0x6]]  ;;  %1791 = vset.pattern.permute.xlu2 %v2107_v15 }
  0x5c   : > { %v2377_v16 = vmax.f32 %v465_v10, 0.0  ;;  %v474_v17 = vadd.f32 %v473_v12, %v471_v11  ;;  %v480_v18 = vmul.f32 %v1581_v9, %v479_v13  ;;  %v482_v19 = vstv %s1583_s21  ;;  %s1593_s22 = sld [smem:[#allocation12 + $0x7]]  ;;  %654 = vperm.xlu2 %1791, %v2369_v0  }
  0x5d   : > { %v488_v20 = vstv %s1585_s15  ;;  %s2380_s4 = sld [smem:[#allocation13 + $0x1]] }
  0x5e   : > { %v2382_v21 = vmax.f32 %v474_v17, 0.0  ;;  %v483_v22 = vadd.f32 %v482_v19, %v480_v18  ;;  %v489_v23 = vmul.f32 %v1584_v14, %v488_v20  ;;  %v491_v24 = vstv %s1586_s28  ;;  %s2384_s3 = sld [smem:[#allocation15 + $0x1]] }
  0x5f   : > { %v517_v25 = vstv %s1590_s29  ;;  %s494_s17 = sld [smem:[#allocation12]] }
  0x60   : > { %v2386_v26 = vmax.f32 %v483_v22, 0.0  ;;  %v492_v27 = vadd.f32 %v491_v24, %v489_v23  ;;  %v518_v28 = vmul.f32 %v517_v25, %v2377_v16  ;;  %v520_v29 = vstv %s1591_s13  ;;  %s1587_s23 = sld [smem:[#allocation12 + $0x1]] }
  0x61   : > { %v521_v30 = vmul.f32 %v520_v29, %v2382_v21  ;;  %v524_v31 = vstv %s1592_s14  ;;  %s1588_s20 = sld [smem:[#allocation12 + $0x2]]  ;;  %v2110_v29 = vmov 1  }
  0x62   : > { %v2390_v32 = vmax.f32 %v492_v27, 0.0  ;;  %v525_v33 = vmul.f32 %v524_v31, %v2386_v26  ;;  %v528_v34 = vstv %s1593_s22  ;;  %s1589_s25 = sld [smem:[#allocation12 + $0x3]] }
  0x63   : > { %v522_v35 = vadd.f32 %v521_v30, %v518_v28  ;;  %s2393_s21 = sld [smem:[#allocation13]]  ;;  %v532_v40 = vstv %s2380_s4 }
  0x64   : > { %v529_v36 = vmul.f32 %v528_v34, %v2390_v32  ;;  %s2396_s15 = sld [smem:[#allocation15]]  ;;  %1792 = vset.pattern.permute.xlu2 %v2108_v37  ;;  %v535_v46 = vstv %s2384_s3  ;;  %v2111_v37 = vmov 10  }
  0x65   : > { %v526_v38 = vadd.f32 %v525_v33, %v522_v35  ;;  %v495_v39 = vstv %s494_s17  ;;  %s1596_s28 = sld [smem:[#allocation12 + $0x8]]  ;;  %678 = vperm.xlu2 %1792, %v2369_v0  }
  0x66   : > { %v496_v41 = vmul.f32 %v495_v39, %v2377_v16  ;;  %v498_v42 = vstv %s1587_s23  ;;  %s1597_s29 = sld [smem:[#allocation12 + $0x9]] }
  0x67   : > { %v530_v43 = vadd.f32 %v529_v36, %v526_v38  ;;  %v499_v44 = vmul.f32 %v498_v42, %v2382_v21  ;;  %v502_v45 = vstv %s1588_s20  ;;  %s1598_s13 = sld [smem:[#allocation12 + $0xa]]  ;;  %v2115_v42 = vmov 2  }
  0x68   : > { %v503_v47 = vmul.f32 %v502_v45, %v2386_v26  ;;  %v506_v48 = vstv %s1589_s25  ;;  %s1599_s14 = sld [smem:[#allocation12 + $0xb]]  ;;  %v2119_v45 = vmov 29  }
  0x69   : > { %v533_v49 = vmul.f32 %v532_v40, %v530_v43  ;;  %v500_v50 = vadd.f32 %v499_v44, %v496_v41  ;;  %v507_v51 = vmul.f32 %v506_v48, %v2390_v32  ;;  %s2405_s22 = sld [smem:[#allocation13 + $0x2]]  ;;  %v510_v55 = vstv %s2393_s21  ;;  %s2109_s21 = smov 17  }
  0x6a   : > { %s2407_s4 = sld [smem:[#allocation15 + $0x2]]  ;;  %v513_v62 = vstv %s2396_s15  ;;  %v2112_v40 = vmov 19   ;;  %v2114_v41 = vmov 28   ;;  %v2116_v43 = vmov 11  }
  0x6b   : > { %v536_v52 = vadd.f32 %v535_v46, %v533_v49  ;;  %v504_v53 = vadd.f32 %v503_v47, %v500_v50  ;;  %v539_v54 = vstv %s1596_s28  ;;  %s1602_s17 = sld [smem:[#allocation12 + $0xc]]  ;;  %s2113_s28 = smov 16   ;;  %v2118_v44 = vmov 20  }
  0x6c   : > { %v540_v56 = vmul.f32 %v539_v54, %v2377_v16  ;;  %v542_v57 = vstv %s1597_s29  ;;  %s1603_s3 = sld [smem:[#allocation12 + $0xd]]  ;;  %s2117_s29 = smov 15   ;;  %v2120_v47 = vmov 3   ;;  %v2121_v49 = vmov 12  }
  0x6d   : > { %v537_v58 = vmax.f32 %v536_v52, 0.0  ;;  %v508_v59 = vadd.f32 %v507_v51, %v504_v53  ;;  %v543_v60 = vmul.f32 %v542_v57, %v2382_v21  ;;  %v546_v61 = vstv %s1598_s13  ;;  %s1604_s23 = sld [smem:[#allocation12 + $0xe]]  ;;  %1793 = vset.pattern.permute.xlu2 %v2110_v29  ;;  %s2123_s13 = smov 1   ;;  %v582_v57 = vld [vmem:[#allocation6] ss:$8 sm:$0x3] }
  0x6e   : > { %v547_v63 = vmul.f32 %v546_v61, %v2386_v26  ;;  %v550_v1 = vstv %s1599_s14  ;;  %s1605_s20 = sld [smem:[#allocation12 + $0xf]]  ;;  %v2122_v50 = vmov 13   ;;  %v2124_v52 = vmov 21   ;;  %s2128_s14 = smov 127  }
  0x6f   : > { %v2414_v2 = vperm.slane %v537_v58, 1  ;;  %v511_v3 = vmul.f32 %v510_v55, %v508_v59  ;;  %v544_v4 = vadd.f32 %v543_v60, %v540_v56  ;;  %v551_v5 = vmul.f32 %v550_v1, %v2390_v32  ;;  %s2417_s25 = sld [smem:[#allocation13 + $0x3]]  ;;  %1806 = vset.pattern.permute.xlu1 %v2122_v50 }
  0x70   : > { %v2419_v6 = vperm.slane %v537_v58, 0  ;;  %v554_v10 = vstv %s2405_s22  ;;  %s1607_s15 = sld [smem:[#allocation15 + $0x3]]  ;;  %v557_v18 = vstv %s2407_s4  ;;  %v2125_v53 = vmov 4   ;;  %s2132_s22 = smov 113  }
  0x71   : > { %617 = vrot.lane.b32.xlu1 %v2414_v2, %s2109_s21  ;;  %v514_v7 = vadd.f32 %v513_v62, %v511_v3  ;;  %v548_v8 = vadd.f32 %v547_v63, %v544_v4  ;;  %v561_v9 = vstv %s1602_s17  ;;  %1805 = vset.pattern.permute.xlu0 %v2125_v53  ;;  %v2126_v56 = vmov 30   ;;  %s2137_s4 = smov 112   ;;  %s2141_s17 = smov 111  }
  0x72   : > { %v562_v11 = vmul.f32 %v561_v9, %v2377_v16  ;;  %v564_v12 = vstv %s1603_s3  ;;  %621 = vrot.lane.b32.xlu2 %v2419_v6, %s2109_s21  ;;  %v2500_v59 = vperm.slane %v582_v57, 0  ;;  %v2502_v60 = vperm.slane %v582_v57, 1  ;;  %s1608_s3 = sld [smem:[#allocation16 + $0x1]] }
  0x73   : > { %v515_v13 = vmax.f32 %v514_v7, 0.0  ;;  %v552_v14 = vadd.f32 %v551_v5, %v548_v8  ;;  %v565_v15 = vmul.f32 %v564_v12, %v2382_v21  ;;  %v568_v17 = vstv %s1604_s23  ;;  %s1371_s23 = sld [smem:[#allocation16]] }
  0x74   : > { %v569_v19 = vmul.f32 %v568_v17, %v2386_v26  ;;  %v572_v20 = vstv %s1605_s20  ;;  %v2127_v4 = vmov 22   ;;  %s1615_s20 = sshll.u32 %s2223_s16, 3 }
  0x75   : > { %v2430_v22 = vperm.slane %v515_v13, 1  ;;  %v555_v23 = vmul.f32 %v554_v10, %v552_v14  ;;  %v566_v24 = vadd.f32 %v565_v15, %v562_v11  ;;  %v573_v16 = vmul.f32 %v572_v20, %v2390_v32 }
  0x76   : > { %v576_v28 = vstv %s2417_s25  ;;  %v579_v31 = vstv %s1607_s15  ;;  %v2439_v33 = vperm.slane %v515_v13, 0  ;;  %s1399_s15 = scalar_lea.hbm %s2808_s9, %s1615_s20 }
  0x77   : > { %585 = vrot.lane.b32.xlu0 %v2430_v22, %s2109_s21  ;;  %v558_v25 = vadd.f32 %v557_v18, %v555_v23  ;;  %v570_v27 = vadd.f32 %v569_v19, %v566_v24  ;;  %v2129_v24 = vmov 31   ;;  %s1403_s16 = sshll.u32 %s1399_s15, 4  ;;  %s1404_s16 = int_to_ptr.hbm [resolvable:$true] %s1403_s16 }
  0x79   : > { %v559_v21 = vmax.f32 %v558_v25, 0.0  ;;  %v574_v30 = vadd.f32 %v573_v16, %v570_v27 }
  0x7a   : > { %707 = vperm.xlu2 %1793, %v2369_v0  }
  0x7b   : > { %v2437_v26 = vperm.slane %v559_v21, 0  ;;  %v577_v34 = vmul.f32 %v576_v28, %v574_v30  ;;  %v2447_v38 = vperm.slane %v559_v21, 1 }
  0x7d   : > { %645 = vrot.lane.b32.xlu1 %v2437_v26, %s2109_s21  ;;  %v580_v32 = vadd.f32 %v579_v31, %v577_v34 }
  0x7f   : > { %589 = vrot.lane.b32.xlu0 %v2439_v33, %s2109_s21  ;;  %v581_v35 = vmax.f32 %v580_v32, 0.0 }
  0x81   : > { %v2445_v36 = vperm.slane %v581_v35, 0  ;;  %v2454_v39 = vperm.slane %v581_v35, 1 }
  0x82   : > { %1794 = vset.pattern.permute.xlu2 %v2111_v37 }
  0x83   : > { %728 = vperm.xlu2 %1794, %v2369_v0  }
  0x85   : > { %669 = vrot.lane.b32.xlu1 %v2445_v36, %s2109_s21 }
  0x87   : > { %641 = vrot.lane.b32.xlu0 %v2447_v38, %s2109_s21 }
  0x8b   : > { %1795 = vset.pattern.permute.xlu2 %v2112_v40 }
  0x8c   : > { %749 = vperm.xlu2 %1795, %v2369_v0  }
  0x8d   : > { %692 = vrot.lane.b32.xlu1 %v2439_v33, %s2113_s28 }
  0x8f   : > { %665 = vrot.lane.b32.xlu0 %v2454_v39, %s2109_s21 }
  0x94   : > { %1796 = vset.pattern.permute.xlu2 %v2114_v41  ;;  %v2130_v41 = vmov 5  }
  0x95   : > { %719 = vrot.lane.b32.xlu1 %v2419_v6, %s2113_s28  ;;  %770 = vperm.xlu2 %1796, %v2369_v0  }
  0x97   : > { %689 = vrot.lane.b32.xlu0 %v2430_v22, %s2113_s28 }
  0x9d   : > { %740 = vrot.lane.b32.xlu1 %v2437_v26, %s2113_s28  ;;  %1797 = vset.pattern.permute.xlu2 %v2115_v42 }
  0x9e   : > { %799 = vperm.xlu2 %1797, %v2369_v0  }
  0x9f   : > { %716 = vrot.lane.b32.xlu0 %v2414_v2, %s2113_s28 }
  0xa5   : > { %761 = vrot.lane.b32.xlu1 %v2445_v36, %s2113_s28 }
  0xa6   : > { %1798 = vset.pattern.permute.xlu2 %v2116_v43 }
  0xa7   : > { %737 = vrot.lane.b32.xlu0 %v2447_v38, %s2113_s28  ;;  %820 = vperm.xlu2 %1798, %v2369_v0  }
  0xad   : > { %784 = vrot.lane.b32.xlu1 %v2439_v33, %s2117_s29  ;;  %v631_v46 = vpop.permute.xlu2 %630 }
  0xaf   : > { %758 = vrot.lane.b32.xlu0 %v2454_v39, %s2113_s28  ;;  %1799 = vset.pattern.permute.xlu2 %v2118_v44  ;;  %s458_s28 = scalar_lea.vmem [#allocation18], %s1568_s18 }
  0xb0   : > { %841 = vperm.xlu2 %1799, %v2369_v0  }
  0xb5   : > { %811 = vrot.lane.b32.xlu1 %v2419_v6, %s2117_s29 }
  0xb6   : > { %v2478_v48 = vpop.permute.xlu2 %654 }
  0xb7   : > { %781 = vrot.lane.b32.xlu0 %v2430_v22, %s2117_s29 }
  0xb8   : > { %1800 = vset.pattern.permute.xlu2 %v2119_v45 }
  0xb9   : > { %862 = vperm.xlu2 %1800, %v2369_v0  }
  0xbd   : > { %832 = vrot.lane.b32.xlu1 %v2437_v26, %s2117_s29 }
  0xbf   : > { %808 = vrot.lane.b32.xlu0 %v2414_v2, %s2117_s29  ;;  %v2485_v51 = vpop.permute.xlu2 %678 }
  0xc1   : > { %1801 = vset.pattern.permute.xlu2 %v2120_v47 }
  0xc2   : > { %891 = vperm.xlu2 %1801, %v2369_v0  }
  0xc5   : > { %853 = vrot.lane.b32.xlu1 %v2445_v36, %s2117_s29  ;;  %v607_v55 = vpop.permute.xlu1 %606 }
  0xc7   : > { %829 = vrot.lane.b32.xlu0 %v2447_v38, %s2117_s29 }
  0xca   : > { %1802 = vset.pattern.permute.xlu2 %v2121_v49 }
  0xcb   : > { %912 = vperm.xlu2 %1802, %v2369_v0  }
  0xcc   : > { %v622_v54 = vpop.permute.xlu2 %621 }
  0xcd   : > { %876 = vrot.lane.b32.xlu1 %v2439_v33, %s2123_s13 }
  0xcf   : > { %850 = vrot.lane.b32.xlu0 %v2454_v39, %s2117_s29  ;;  %s1401_s29 = sshll.u32 %s458_s28, 4  ;;  %s1402_s29 = int_to_ptr.vmem [resolvable:$true] %s1401_s29 }
  0xd3   : > { %1803 = vset.pattern.permute.xlu2 %v2124_v52 }
  0xd4   : > { %933 = vperm.xlu2 %1803, %v2369_v0   ;;  %v2498_v58 = vpop.permute.xlu2 %707 }
  0xd5   : > { %903 = vrot.lane.b32.xlu1 %v2419_v6, %s2123_s13 }
  0xd7   : > { %873 = vrot.lane.b32.xlu0 %v2430_v22, %s2123_s13 }
  0xdc   : > { %1804 = vset.pattern.permute.xlu2 %v2126_v56 }
  0xdd   : > { %924 = vrot.lane.b32.xlu1 %v2437_v26, %s2123_s13  ;;  %954 = vperm.xlu2 %1804, %v2369_v0   ;;  %v2513_v8 = vpop.permute.xlu2 %728 }
  0xdf   : > { %900 = vrot.lane.b32.xlu0 %v2414_v2, %s2123_s13 }
  0xe3   : > { %v618_v61 = vpop.permute.xlu1 %617 }
  0xe4   : > { %v623_v62 = vsel %vm591_vm0, %v622_v54, %v618_v61  ;;  %v626_v63 = vsel %vm591_vm0, %v618_v61, %v622_v54 }
  0xe5   : > { %945 = vrot.lane.b32.xlu1 %v2445_v36, %s2123_s13  ;;  %v627_v1 = vmul.f32 %v626_v63, %v2500_v59  ;;  %v628_v3 = vmul.f32 %v623_v62, %v2502_v60  ;;  %1807 = vset.pattern.permute.xlu2 %v2127_v4  ;;  %v2131_v62 = vmov 14  }
  0xe6   : > { %984 = vperm.xlu2 %1807, %v2369_v0   ;;  %v2520_v13 = vpop.permute.xlu2 %749 }
  0xe7   : > { %921 = vrot.lane.b32.xlu0 %v2447_v38, %s2123_s13  ;;  %v633_v5 = vperm.slane %v627_v1, 0  ;;  %v634_v7 = vperm.slane %v628_v3, 0 }
  0xe9   : > { %v635_v9 = vmul.f32 %v633_v5, %v631_v46  ;;  %v636_v10 = vmul.f32 %v634_v7, %v631_v46  ;;  %v586_v11 = vpop.permute.xlu0 %585 }
  0xed   : > { %974 = vperm.xlu1 %1806, %v2369_v0  }
  0xee   : > { %1005 = vrot.lane.b32.xlu2 %v2439_v33, %s2128_s14 }
  0xef   : > { %942 = vrot.lane.b32.xlu0 %v2454_v39, %s2123_s13  ;;  %v646_v12 = vpop.permute.xlu1 %645  ;;  %v2530_v28 = vpop.permute.xlu2 %770  ;;  %s2021_s13 = sshra.s32 %s1404_s16, 4  ;;  %s2022_s13 = int_to_ptr.hbm [resolvable:$true] %s2021_s13 }
  0xf0   : > { %p2028_p12 = scmp.lt.s32.totalorder %s2022_s13, %s2808_s9 }
  0xf1   : > { %v590_v14 = vpop.permute.xlu0 %589 }
  0xf2   : > { %v592_v15 = vsel %vm591_vm0, %v590_v14, %v586_v11  ;;  %v595_v17 = vsel %vm591_vm0, %v586_v11, %v590_v14 }
  0xf3   : > { %v601_v18 = vmul.f32 %v2500_v59, %v595_v17  ;;  %v602_v19 = vmul.f32 %v2502_v60, %v592_v15 }
  0xf5   : > { %v609_v20 = vperm.slane %v601_v18, 0  ;;  %v610_v23 = vperm.slane %v602_v19, 0  ;;  %1808 = vset.pattern.permute.xlu1 %v2129_v24  ;;  %v2133_v18 = vmov 23  }
  0xf6   : > { %994 = vperm.xlu1 %1808, %v2369_v0   ;;  %1032 = vrot.lane.b32.xlu2 %v2419_v6, %s2128_s14 }
  0xf7   : > { %v611_v16 = vmul.f32 %v609_v20, %v607_v55  ;;  %v612_v25 = vmul.f32 %v610_v23, %v607_v55  ;;  %964 = vperm.xlu0 %1805, %v2369_v0   ;;  %v670_v27 = vpop.permute.xlu1 %669 }
  0xf8   : > { %v2543_v45 = vpop.permute.xlu2 %799 }
  0xf9   : > { %v637_v29 = vadd.f32 %v635_v9, %v611_v16  ;;  %v638_v21 = vadd.f32 %v636_v10, %v612_v25  ;;  %v642_v30 = vpop.permute.xlu0 %641 }
  0xfa   : > { %v647_v31 = vsel %vm591_vm0, %v646_v12, %v642_v30  ;;  %v650_v34 = vsel %vm591_vm0, %v642_v30, %v646_v12 }
  0xfb   : > { %v651_v32 = vmul.f32 %v650_v34, %v2500_v59  ;;  %v652_v35 = vmul.f32 %v647_v31, %v2502_v60 }
  0xfd   : > { %v657_v37 = vperm.slane %v651_v32, 0  ;;  %v658_v40 = vperm.slane %v652_v35, 0 }
  0xfe   : > { %1809 = vset.pattern.permute.xlu1 %v2130_v41  ;;  %1053 = vrot.lane.b32.xlu2 %v2437_v26, %s2128_s14 }
  0xff   : > { %v659_v42 = vmul.f32 %v657_v37, %v2478_v48  ;;  %v660_v43 = vmul.f32 %v658_v40, %v2478_v48  ;;  %1007 = vrot.lane.b32.xlu0 %v2430_v22, %s2128_s14  ;;  %1023 = vperm.xlu1 %1809, %v2369_v0   ;;  %v693_v44 = vpop.permute.xlu1 %692  ;;  %v688_v48 = vld [vmem:[#allocation6 + $0x1] ss:$8 sm:$0x3]  ;;  %v2134_v40 = vmov 32  }
 0x100   : > { %v701_v1 = vperm.slane %v688_v48, 1 }
 0x101   : > { %v661_v46 = vadd.f32 %v659_v42, %v637_v29  ;;  %v662_v47 = vadd.f32 %v660_v43, %v638_v21  ;;  %v666_v49 = vpop.permute.xlu0 %665 }
 0x102   : > { %v671_v50 = vsel %vm591_vm0, %v670_v27, %v666_v49  ;;  %v674_v52 = vsel %vm591_vm0, %v666_v49, %v670_v27 }
 0x103   : > { %v675_v53 = vmul.f32 %v674_v52, %v2500_v59  ;;  %v676_v54 = vmul.f32 %v671_v50, %v2502_v60  ;;  %v700_v59 = vperm.slane %v688_v48, 0  ;;  %v2555_v60 = vpop.permute.xlu2 %820 }
 0x105   : > { %v681_v55 = vperm.slane %v675_v53, 0  ;;  %v682_v56 = vperm.slane %v676_v54, 0 }
 0x106   : > { %1074 = vrot.lane.b32.xlu2 %v2445_v36, %s2128_s14 }
 0x107   : > { %v683_v57 = vmul.f32 %v681_v55, %v2485_v51  ;;  %v684_v61 = vmul.f32 %v682_v56, %v2485_v51  ;;  %1034 = vrot.lane.b32.xlu0 %v2414_v2, %s2128_s14  ;;  %1810 = vset.pattern.permute.xlu1 %v2131_v62  ;;  %v720_v63 = vpop.permute.xlu1 %719 }
 0x108   : > { %1044 = vperm.xlu1 %1810, %v2369_v0  }
 0x109   : > { %v685_v3 = vadd.f32 %v683_v57, %v661_v46  ;;  %v686_v4 = vadd.f32 %v684_v61, %v662_v47  ;;  %v690_v5 = vpop.permute.xlu0 %689  ;;  %v2135_v57 = vmov 6  }
 0x10a   : > { %v695_v7 = vsel %vm694_vm1, %v693_v44, %v690_v5  ;;  %v698_v9 = vsel %vm694_vm1, %v690_v5, %v693_v44 }
 0x10b   : > { %v704_v51 = vmul.f32 %v700_v59, %v698_v9  ;;  %v705_v10 = vmul.f32 %v701_v1, %v695_v7  ;;  %v2567_v24 = vpop.permute.xlu2 %841 }
 0x10d   : > { %v710_v11 = vperm.slane %v704_v51, 0  ;;  %v711_v12 = vperm.slane %v705_v10, 0 }
 0x10e   : > { %1097 = vrot.lane.b32.xlu2 %v2439_v33, %s2132_s22 }
 0x10f   : > { %v712_v14 = vmul.f32 %v710_v11, %v2498_v58  ;;  %v713_v15 = vmul.f32 %v711_v12, %v2498_v58  ;;  %1055 = vrot.lane.b32.xlu0 %v2447_v38, %s2128_s14  ;;  %v741_v17 = vpop.permute.xlu1 %740 }
 0x110   : > { %1811 = vset.pattern.permute.xlu1 %v2133_v18  ;;  %v2136_v18 = vmov 15  }
 0x111   : > { %v714_v19 = vadd.f32 %v712_v14, %v685_v3  ;;  %v715_v20 = vadd.f32 %v713_v15, %v686_v4  ;;  %v717_v23 = vpop.permute.xlu0 %716  ;;  %1065 = vperm.xlu1 %1811, %v2369_v0  }
 0x112   : > { %v721_v16 = vsel %vm694_vm1, %v720_v63, %v717_v23  ;;  %v724_v25 = vsel %vm694_vm1, %v717_v23, %v720_v63  ;;  %v780_v63 = vld [vmem:[#allocation6 + $0x2] ss:$8 sm:$0x3] }
 0x113   : > { %v725_v27 = vmul.f32 %v724_v25, %v700_v59  ;;  %v726_v29 = vmul.f32 %v721_v16, %v701_v1  ;;  %v2580_v46 = vpop.permute.xlu2 %862  ;;  %v793_v9 = vperm.slane %v780_v63, 1 }
 0x115   : > { %v731_v58 = vperm.slane %v725_v27, 0  ;;  %v732_v21 = vperm.slane %v726_v29, 0 }
 0x116   : > { %1124 = vrot.lane.b32.xlu2 %v2419_v6, %s2132_s22 }
 0x117   : > { %v733_v30 = vmul.f32 %v731_v58, %v2513_v8  ;;  %v734_v31 = vmul.f32 %v732_v21, %v2513_v8  ;;  %1076 = vrot.lane.b32.xlu0 %v2454_v39, %s2128_s14  ;;  %v762_v34 = vpop.permute.xlu1 %761  ;;  %s2023_s14 = scalar_lea.hbm %s2022_s13, 8 }
 0x118   : > { %p2024_p1 = scmp.ne.s32.totalorder %s2022_s13, %s2023_s14 }
 0x119   : > { %v735_v32 = vadd.f32 %v733_v30, %v714_v19  ;;  %v736_v35 = vadd.f32 %v734_v31, %v715_v20  ;;  %v738_v37 = vpop.permute.xlu0 %737  ;;  %1812 = vset.pattern.permute.xlu1 %v2134_v40 }
 0x11a   : > { %v742_v41 = vsel %vm694_vm1, %v741_v17, %v738_v37  ;;  %v745_v42 = vsel %vm694_vm1, %v738_v37, %v741_v17  ;;  %1086 = vperm.xlu1 %1812, %v2369_v0   ;;  %p2025_p3 = pnand %p2024_p1, %p2306_p4 }
 0x11b   : > { %v746_v43 = vmul.f32 %v745_v42, %v700_v59  ;;  %v747_v44 = vmul.f32 %v742_v41, %v701_v1 }
 0x11c   : > { %v2591_v4 = vpop.permute.xlu2 %891  ;;  %p2026_p5 = pneg %p2025_p3 }
 0x11d   : > { %v752_v8 = vperm.slane %v746_v43, 0  ;;  %v753_v47 = vperm.slane %v747_v44, 0 }
 0x11e   : > { %1145 = vrot.lane.b32.xlu2 %v2437_v26, %s2132_s22 }
 0x11f   : > { %v754_v49 = vmul.f32 %v752_v8, %v2520_v13  ;;  %v755_v50 = vmul.f32 %v753_v47, %v2520_v13  ;;  %1099 = vrot.lane.b32.xlu0 %v2430_v22, %s2132_s22  ;;  %v785_v52 = vpop.permute.xlu1 %784 }
 0x121   : > { %v756_v53 = vadd.f32 %v754_v49, %v735_v32  ;;  %v757_v54 = vadd.f32 %v755_v50, %v736_v35  ;;  %v759_v48 = vpop.permute.xlu0 %758  ;;  %v2138_v32 = vmov 24  }
 0x122   : > { %v763_v55 = vsel %vm694_vm1, %v762_v34, %v759_v48  ;;  %v766_v56 = vsel %vm694_vm1, %v759_v48, %v762_v34  ;;  %1813 = vset.pattern.permute.xlu1 %v2135_v57  ;;  %v2139_v48 = vmov 33  }
 0x123   : > { %v767_v61 = vmul.f32 %v766_v56, %v700_v59  ;;  %v768_v62 = vmul.f32 %v763_v55, %v701_v1  ;;  %1115 = vperm.xlu1 %1813, %v2369_v0   ;;  %v792_v1 = vperm.slane %v780_v63, 0 }
 0x125   : > { %v773_v3 = vperm.slane %v767_v61, 0  ;;  %v774_v13 = vperm.slane %v768_v62, 0  ;;  %v2608_v25 = vpop.permute.xlu2 %912 }
 0x126   : > { %1166 = vrot.lane.b32.xlu2 %v2445_v36, %s2132_s22 }
 0x127   : > { %v775_v5 = vmul.f32 %v773_v3, %v2530_v28  ;;  %v776_v7 = vmul.f32 %v774_v13, %v2530_v28  ;;  %1126 = vrot.lane.b32.xlu0 %v2414_v2, %s2132_s22  ;;  %v812_v59 = vpop.permute.xlu1 %811 }
 0x129   : > { %v777_v51 = vadd.f32 %v775_v5, %v756_v53  ;;  %v778_v10 = vadd.f32 %v776_v7, %v757_v54  ;;  %v782_v11 = vpop.permute.xlu0 %781 }
 0x12a   : > { %v787_v12 = vsel %vm786_vm2, %v785_v52, %v782_v11  ;;  %v790_v14 = vsel %vm786_vm2, %v782_v11, %v785_v52  ;;  %v2140_v11 = vmov 7  }
 0x12b   : > { %v796_v15 = vmul.f32 %v792_v1, %v790_v14  ;;  %v797_v17 = vmul.f32 %v793_v9, %v787_v12  ;;  %1814 = vset.pattern.permute.xlu1 %v2136_v18 }
 0x12c   : > { %1136 = vperm.xlu1 %1814, %v2369_v0  }
 0x12d   : > { %v802_v28 = vperm.slane %v796_v15, 0  ;;  %v803_v19 = vperm.slane %v797_v17, 0 }
 0x12e   : > { %1189 = vrot.lane.b32.xlu2 %v2439_v33, %s2137_s4  ;;  %v2619_v8 = vpop.permute.xlu2 %933 }
 0x12f   : > { %v804_v20 = vmul.f32 %v802_v28, %v2543_v45  ;;  %v805_v23 = vmul.f32 %v803_v19, %v2543_v45  ;;  %1147 = vrot.lane.b32.xlu0 %v2447_v38, %s2132_s22  ;;  %v833_v16 = vpop.permute.xlu1 %832 }
 0x131   : > { %v806_v27 = vadd.f32 %v804_v20, %v777_v51  ;;  %v807_v29 = vadd.f32 %v805_v23, %v778_v10  ;;  %v809_v58 = vpop.permute.xlu0 %808 }
 0x132   : > { %v813_v21 = vsel %vm786_vm2, %v812_v59, %v809_v58  ;;  %v816_v30 = vsel %vm786_vm2, %v809_v58, %v812_v59  ;;  %v872_v59 = vld [vmem:[#allocation6 + $0x3] ss:$8 sm:$0x3] }
 0x133   : > { %v817_v31 = vmul.f32 %v816_v30, %v792_v1  ;;  %v818_v34 = vmul.f32 %v813_v21, %v793_v9  ;;  %v2643_v14 = vperm.slane %v872_v59, 1  ;;  %v2142_v21 = vmov 16  }
 0x134   : > { %1815 = vset.pattern.permute.xlu1 %v2138_v32 }
 0x135   : > { %v823_v35 = vperm.slane %v817_v31, 0  ;;  %v824_v37 = vperm.slane %v818_v34, 0  ;;  %1157 = vperm.xlu1 %1815, %v2369_v0  }
 0x136   : > { %1216 = vrot.lane.b32.xlu2 %v2419_v6, %s2137_s4 }
 0x137   : > { %v825_v45 = vmul.f32 %v823_v35, %v2555_v60  ;;  %v826_v40 = vmul.f32 %v824_v37, %v2555_v60  ;;  %1168 = vrot.lane.b32.xlu0 %v2454_v39, %s2132_s22  ;;  %v854_v41 = vpop.permute.xlu1 %853  ;;  %v2632_v7 = vpop.permute.xlu2 %954 }
 0x139   : > { %v827_v42 = vadd.f32 %v825_v45, %v806_v27  ;;  %v828_v43 = vadd.f32 %v826_v40, %v807_v29  ;;  %v830_v44 = vpop.permute.xlu0 %829 }
 0x13a   : > { %v834_v47 = vsel %vm786_vm2, %v833_v16, %v830_v44  ;;  %v837_v49 = vsel %vm786_vm2, %v830_v44, %v833_v16 }
 0x13b   : > { %v838_v50 = vmul.f32 %v837_v49, %v792_v1  ;;  %v839_v52 = vmul.f32 %v834_v47, %v793_v9 }
 0x13d   : > { %v844_v53 = vperm.slane %v838_v50, 0  ;;  %v845_v54 = vperm.slane %v839_v52, 0  ;;  %1816 = vset.pattern.permute.xlu1 %v2139_v48  ;;  %v2144_v50 = vmov 25   ;;  %v2145_v52 = vmov 26  }
 0x13e   : > { %1178 = vperm.xlu1 %1816, %v2369_v0   ;;  %1237 = vrot.lane.b32.xlu2 %v2437_v26, %s2137_s4 }
 0x13f   : > { %v846_v60 = vmul.f32 %v844_v53, %v2567_v24  ;;  %v847_v55 = vmul.f32 %v845_v54, %v2567_v24  ;;  %1191 = vrot.lane.b32.xlu0 %v2430_v22, %s2137_s4  ;;  %v877_v56 = vpop.permute.xlu1 %876 }
 0x140   : > { %v2649_v27 = vpop.permute.xlu2 %984  ;;  %1823 = vset.pattern.permute.xlu0 %v2145_v52 }
 0x141   : > { %v848_v57 = vadd.f32 %v846_v60, %v827_v42  ;;  %v849_v61 = vadd.f32 %v847_v55, %v828_v43  ;;  %v851_v62 = vpop.permute.xlu0 %850 }
 0x142   : > { %v855_v63 = vsel %vm786_vm2, %v854_v41, %v851_v62  ;;  %v858_v3 = vsel %vm786_vm2, %v851_v62, %v854_v41  ;;  %v2146_v62 = vmov 8  }
 0x143   : > { %v859_v13 = vmul.f32 %v858_v3, %v792_v1  ;;  %v860_v5 = vmul.f32 %v855_v63, %v793_v9  ;;  %v2641_v9 = vperm.slane %v872_v59, 0 }
 0x145   : > { %v865_v51 = vperm.slane %v859_v13, 0  ;;  %v866_v10 = vperm.slane %v860_v5, 0 }
 0x146   : > { %1817 = vset.pattern.permute.xlu1 %v2140_v11  ;;  %1258 = vrot.lane.b32.xlu2 %v2445_v36, %s2137_s4 }
 0x147   : > { %v867_v24 = vmul.f32 %v865_v51, %v2580_v46  ;;  %v868_v12 = vmul.f32 %v866_v10, %v2580_v46  ;;  %1218 = vrot.lane.b32.xlu0 %v2414_v2, %s2137_s4  ;;  %1207 = vperm.xlu1 %1817, %v2369_v0   ;;  %v904_v1 = vpop.permute.xlu1 %903 }
 0x148   : > { %v2667_v49 = vpop.permute.xlu2 %1005 }
 0x149   : > { %v869_v15 = vadd.f32 %v867_v24, %v848_v57  ;;  %v870_v17 = vadd.f32 %v868_v12, %v849_v61  ;;  %v874_v18 = vpop.permute.xlu0 %873  ;;  %v2147_v12 = vmov 35  }
 0x14a   : > { %v879_v28 = vsel %vm878_vm3, %v877_v56, %v874_v18  ;;  %v882_v19 = vsel %vm878_vm3, %v874_v18, %v877_v56 }
 0x14b   : > { %v888_v20 = vmul.f32 %v2641_v9, %v882_v19  ;;  %v889_v46 = vmul.f32 %v2643_v14, %v879_v28  ;;  %v2148_v28 = vmov 17  }
 0x14d   : > { %v894_v23 = vperm.slane %v888_v20, 0  ;;  %v895_v16 = vperm.slane %v889_v46, 0  ;;  %v1826_v20 = vld [vmem:[#allocation8] sm:$0xf] }
 0x14e   : > { %1283 = vrot.lane.b32.xlu2 %v2430_v22, %s2141_s17 }
 0x14f   : > { %v896_v29 = vmul.f32 %v894_v23, %v2591_v4  ;;  %v897_v58 = vmul.f32 %v895_v16, %v2591_v4  ;;  %1239 = vrot.lane.b32.xlu0 %v2447_v38, %s2137_s4  ;;  %1818 = vset.pattern.permute.xlu1 %v2142_v21  ;;  %v925_v30 = vpop.permute.xlu1 %924  ;;  %v2143_v4 = vmov 34  }
 0x150   : > { %1228 = vperm.xlu1 %1818, %v2369_v0   ;;  %1820 = vset.pattern.permute.xlu2 %v2143_v4  ;;  %v1033_v10 = vpop.permute.xlu2 %1032 }
 0x151   : > { %v898_v31 = vadd.f32 %v896_v29, %v869_v15  ;;  %v899_v34 = vadd.f32 %v897_v58, %v870_v17  ;;  %v901_v32 = vpop.permute.xlu0 %900  ;;  %v990_v29 = vmul.f32 %v2649_v27, %v2447_v38 }
 0x152   : > { %v905_v35 = vsel %vm878_vm3, %v904_v1, %v901_v32  ;;  %v908_v37 = vsel %vm878_vm3, %v901_v32, %v904_v1  ;;  %v1004_v32 = vld [vmem:[#allocation6 + $0x5] ss:$8 sm:$0x3] }
 0x153   : > { %v909_v45 = vmul.f32 %v908_v37, %v2641_v9  ;;  %v910_v40 = vmul.f32 %v905_v35, %v2643_v14 }
 0x155   : > { %v915_v41 = vperm.slane %v909_v45, 0  ;;  %v916_v42 = vperm.slane %v910_v40, 0 }
 0x156   : > { %1270 = vperm.xlu2 %1820, %v2369_v0  }
 0x157   : > { %v917_v43 = vmul.f32 %v915_v41, %v2608_v25  ;;  %v918_v44 = vmul.f32 %v916_v42, %v2608_v25  ;;  %1260 = vrot.lane.b32.xlu0 %v2454_v39, %s2137_s4  ;;  %v946_v47 = vpop.permute.xlu1 %945 }
 0x158   : > { %1819 = vset.pattern.permute.xlu1 %v2144_v50  ;;  %v1054_v58 = vpop.permute.xlu2 %1053 }
 0x159   : > { %v919_v53 = vadd.f32 %v917_v43, %v898_v31  ;;  %v920_v54 = vadd.f32 %v918_v44, %v899_v34  ;;  %v922_v48 = vpop.permute.xlu0 %921  ;;  %1249 = vperm.xlu1 %1819, %v2369_v0  }
 0x15a   : > { %v926_v60 = vsel %vm878_vm3, %v925_v30, %v922_v48  ;;  %v929_v55 = vsel %vm878_vm3, %v922_v48, %v925_v30 }
 0x15b   : > { %v930_v25 = vmul.f32 %v929_v55, %v2641_v9  ;;  %v931_v56 = vmul.f32 %v926_v60, %v2643_v14 }
 0x15d   : > { %v936_v57 = vperm.slane %v930_v25, 0  ;;  %v937_v61 = vperm.slane %v931_v56, 0 }
 0x15e   : > { %1821 = vset.pattern.permute.xlu2 %v2146_v62 }
 0x15f   : > { %v938_v63 = vmul.f32 %v936_v57, %v2619_v8  ;;  %v939_v3 = vmul.f32 %v937_v61, %v2619_v8  ;;  %1308 = vrot.lane.b32.xlu0 %v2419_v6, %s2141_s17  ;;  %v975_v13 = vpop.permute.xlu1 %974  ;;  %1299 = vperm.xlu2 %1821, %v2369_v0  }
 0x160   : > { %v979_v21 = vmul.f32 %v975_v13, %v2419_v6  ;;  %v980_v30 = vmul.f32 %v975_v13, %v2414_v2 }
 0x161   : > { %v940_v5 = vadd.f32 %v938_v63, %v919_v53  ;;  %v941_v59 = vadd.f32 %v939_v3, %v920_v54  ;;  %v943_v51 = vpop.permute.xlu0 %942  ;;  %1281 = vrot.lane.b32.xlu1 %v2439_v33, %s2141_s17 }
 0x162   : > { %v947_v11 = vsel %vm878_vm3, %v946_v47, %v943_v51  ;;  %v950_v24 = vsel %vm878_vm3, %v943_v51, %v946_v47  ;;  %1824 = vset.pattern.permute.xlu1 %v2147_v12 }
 0x163   : > { %v951_v8 = vmul.f32 %v950_v24, %v2641_v9  ;;  %v952_v1 = vmul.f32 %v947_v11, %v2643_v14 }
 0x165   : > { %v957_v15 = vperm.slane %v951_v8, 0  ;;  %v958_v0 = vperm.slane %v952_v1, 0 }
 0x167   : > { %v959_v17 = vmul.f32 %v957_v15, %v2632_v7  ;;  %v960_v18 = vmul.f32 %v958_v0, %v2632_v7  ;;  %1329 = vrot.lane.b32.xlu0 %v2437_v26, %s2141_s17  ;;  %1822 = vset.pattern.permute.xlu2 %v2148_v28  ;;  %v989_v7 = vmul.f32 %v2649_v27, %v2437_v26 }
 0x168   : > { %v995_v19 = vpop.permute.xlu1 %994  ;;  %1320 = vperm.xlu2 %1822, %v1826_v20  }
 0x169   : > { %v961_v46 = vadd.f32 %v959_v17, %v940_v5  ;;  %v962_v23 = vadd.f32 %v960_v18, %v941_v59  ;;  %v965_v16 = vpop.permute.xlu0 %964  ;;  %1310 = vrot.lane.b32.xlu1 %v2414_v2, %s2141_s17  ;;  %v999_v27 = vmul.f32 %v995_v19, %v2445_v36  ;;  %v1000_v40 = vmul.f32 %v995_v19, %v2454_v39 }
 0x16a   : > { %v969_v9 = vmul.f32 %v965_v16, %v2439_v33  ;;  %v970_v14 = vmul.f32 %v965_v16, %v2430_v22  ;;  %v1016_v22 = vperm.slane %v1004_v32, 0  ;;  %v1017_v33 = vperm.slane %v1004_v32, 1 }
 0x16c   : > { %v971_v31 = vadd.f32 %v969_v9, %v961_v46  ;;  %v972_v34 = vadd.f32 %v970_v14, %v962_v23  ;;  %v1096_v14 = vld [vmem:[#allocation6 + $0x6] ss:$8 sm:$0x3] }
 0x16e   : > { %v981_v35 = vadd.f32 %v979_v21, %v971_v31  ;;  %v982_v37 = vadd.f32 %v980_v30, %v972_v34  ;;  %v1108_v30 = vperm.slane %v1096_v14, 0  ;;  %v1109_v31 = vperm.slane %v1096_v14, 1 }
 0x16f   : > { %1350 = vrot.lane.b32.xlu0 %v2445_v36, %s2141_s17  ;;  %v1075_v36 = vpop.permute.xlu2 %1074 }
 0x170   : > { %v991_v26 = vadd.f32 %v989_v7, %v981_v35  ;;  %v992_v45 = vadd.f32 %v990_v29, %v982_v37 }
 0x171   : > { %v1008_v6 = vpop.permute.xlu0 %1007  ;;  %1331 = vrot.lane.b32.xlu1 %v2447_v38, %s2141_s17  ;;  %v1024_v2 = vpop.permute.xlu1 %1023 }
 0x172   : > { %v1001_v4 = vadd.f32 %v999_v27, %v991_v26  ;;  %v1002_v41 = vadd.f32 %v1000_v40, %v992_v45  ;;  %v1010_v42 = vsel %vm1009_vm4, %v2667_v49, %v1008_v6  ;;  %v1014_v43 = vsel %vm1009_vm4, %v1008_v6, %v2667_v49 }
 0x173   : > { %v1020_v44 = vmul.f32 %v1016_v22, %v1010_v42  ;;  %v1021_v47 = vmul.f32 %v1017_v33, %v1014_v43 }
 0x175   : > { %v1026_v50 = vperm.slane %v1020_v44, 0  ;;  %v1027_v52 = vperm.slane %v1021_v47, 0 }
 0x177   : > { %v1028_v53 = vmul.f32 %v1026_v50, %v1024_v2  ;;  %v1029_v54 = vmul.f32 %v1027_v52, %v1024_v2  ;;  %1341 = vperm.xlu0 %1823, %v1826_v20   ;;  %v1098_v13 = vpop.permute.xlu2 %1097 }
 0x179   : > { %v1030_v48 = vadd.f32 %v1028_v53, %v1001_v4  ;;  %v1031_v60 = vadd.f32 %v1029_v54, %v1002_v41  ;;  %v1035_v38 = vpop.permute.xlu0 %1034  ;;  %1352 = vrot.lane.b32.xlu1 %v2454_v39, %s2141_s17  ;;  %s2027_s17 = scalar_lea.hbm %s2808_s9, 16 }
 0x17a   : > { %v1036_v55 = vsel %vm1009_vm4, %v1033_v10, %v1035_v38  ;;  %v1040_v25 = vsel %vm1009_vm4, %v1035_v38, %v1033_v10  ;;  %v1045_v56 = vpop.permute.xlu1 %1044  ;;  %p2029_p7 = scmp.lt.s32.totalorder %s2027_s17, %s2023_s14 }
 0x17b   : > { %v1041_v49 = vmul.f32 %v1036_v55, %v1016_v22  ;;  %v1042_v57 = vmul.f32 %v1040_v25, %v1017_v33 }
 0x17c   : > { %p2030_p8 = por %p2029_p7, %p2028_p12 }
 0x17d   : > { %v1047_v61 = vperm.slane %v1041_v49, 0  ;;  %v1048_v62 = vperm.slane %v1042_v57, 0 }
 0x17e   : > { %p2031_p9 = pnand %p2030_p8, %p2026_p5 }
 0x17f   : > { %v1049_v63 = vmul.f32 %v1047_v61, %v1045_v56  ;;  %v1050_v3 = vmul.f32 %v1048_v62, %v1045_v56  ;;  %1825 = vset.pattern.permute.xlu0 %v2147_v12  ;;  %v1125_v46 = vpop.permute.xlu2 %1124 }
 0x181   : > { %v1051_v5 = vadd.f32 %v1049_v63, %v1030_v48  ;;  %v1052_v59 = vadd.f32 %v1050_v3, %v1031_v60  ;;  %v1056_v51 = vpop.permute.xlu0 %1055  ;;  %1362 = vperm.xlu1 %1824, %v1826_v20  }
 0x182   : > { %v1057_v39 = vsel %vm1009_vm4, %v1054_v58, %v1056_v51  ;;  %v1061_v11 = vsel %vm1009_vm4, %v1056_v51, %v1054_v58 }
 0x183   : > { %v1062_v24 = vmul.f32 %v1057_v39, %v1016_v22  ;;  %v1063_v10 = vmul.f32 %v1061_v11, %v1017_v33  ;;  %v1066_v8 = vpop.permute.xlu1 %1065 }
 0x185   : > { %v1068_v1 = vperm.slane %v1062_v24, 0  ;;  %v1069_v15 = vperm.slane %v1063_v10, 0  ;;  %v1188_v10 = vld [vmem:[#allocation6 + $0x7] ss:$8 sm:$0x3] }
 0x187   : > { %v1070_v0 = vmul.f32 %v1068_v1, %v1066_v8  ;;  %v1071_v17 = vmul.f32 %v1069_v15, %v1066_v8 }
 0x189   : > { %v1072_v18 = vadd.f32 %v1070_v0, %v1051_v5  ;;  %v1073_v28 = vadd.f32 %v1071_v17, %v1052_v59  ;;  %v1077_v19 = vpop.permute.xlu0 %1076 }
 0x18a   : > { %v1078_v12 = vsel %vm1009_vm4, %v1075_v36, %v1077_v19  ;;  %v1082_v23 = vsel %vm1009_vm4, %v1077_v19, %v1075_v36 }
 0x18b   : > { %v1083_v20 = vmul.f32 %v1078_v12, %v1016_v22  ;;  %v1084_v16 = vmul.f32 %v1082_v23, %v1017_v33  ;;  %v1146_v22 = vpop.permute.xlu2 %1145 }
 0x18c   : > { %v1087_v9 = vpop.permute.xlu1 %1086 }
 0x18d   : > { %v1089_v7 = vperm.slane %v1083_v20, 0  ;;  %v1090_v29 = vperm.slane %v1084_v16, 0 }
 0x18f   : > { %v1091_v58 = vmul.f32 %v1089_v7, %v1087_v9  ;;  %v1092_v21 = vmul.f32 %v1090_v29, %v1087_v9 }
 0x191   : > { %v1093_v34 = vadd.f32 %v1091_v58, %v1072_v18  ;;  %v1094_v32 = vadd.f32 %v1092_v21, %v1073_v28  ;;  %v1100_v35 = vpop.permute.xlu0 %1099  ;;  %v1200_v18 = vperm.slane %v1188_v10, 0  ;;  %v1201_v28 = vperm.slane %v1188_v10, 1 }
 0x192   : > { %v1102_v37 = vsel %vm1101_vm5, %v1098_v13, %v1100_v35  ;;  %v1106_v26 = vsel %vm1101_vm5, %v1100_v35, %v1098_v13 }
 0x193   : > { %v1112_v45 = vmul.f32 %v1108_v30, %v1102_v37  ;;  %v1113_v27 = vmul.f32 %v1109_v31, %v1106_v26  ;;  %v1167_v44 = vpop.permute.xlu2 %1166 }
 0x195   : > { %v1118_v33 = vperm.slane %v1112_v45, 0  ;;  %v1119_v40 = vperm.slane %v1113_v27, 0  ;;  %v1116_v6 = vpop.permute.xlu1 %1115 }
 0x197   : > { %v1120_v2 = vmul.f32 %v1118_v33, %v1116_v6  ;;  %v1121_v4 = vmul.f32 %v1119_v40, %v1116_v6 }
 0x199   : > { %v1122_v41 = vadd.f32 %v1120_v2, %v1093_v34  ;;  %v1123_v42 = vadd.f32 %v1121_v4, %v1094_v32  ;;  %v1127_v43 = vpop.permute.xlu0 %1126 }
 0x19a   : > { %v1128_v62 = vsel %vm1101_vm5, %v1125_v46, %v1127_v43  ;;  %v1132_v63 = vsel %vm1101_vm5, %v1127_v43, %v1125_v46 }
 0x19b   : > { %v1190_v52 = vpop.permute.xlu2 %1189  ;;  %v1133_v59 = vmul.f32 %v1128_v62, %v1108_v30  ;;  %v1134_v51 = vmul.f32 %v1132_v63, %v1109_v31 }
 0x19d   : > { %v1139_v1 = vperm.slane %v1133_v59, 0  ;;  %v1140_v15 = vperm.slane %v1134_v51, 0 }
 0x19e   : > { %v1137_v47 = vpop.permute.xlu1 %1136 }
 0x19f   : > { %v1141_v14 = vmul.f32 %v1139_v1, %v1137_v47  ;;  %v1142_v7 = vmul.f32 %v1140_v15, %v1137_v47 }
 0x1a1   : > { %v1148_v50 = vpop.permute.xlu0 %1147  ;;  %v1144_v6 = vadd.f32 %v1142_v7, %v1123_v42 }
 0x1a2   : > { %v1149_v13 = vsel %vm1101_vm5, %v1146_v22, %v1148_v50  ;;  %v1153_v5 = vsel %vm1101_vm5, %v1148_v50, %v1146_v22 }
 0x1a3   : > { %v1217_v48 = vpop.permute.xlu2 %1216  ;;  %v1154_v11 = vmul.f32 %v1149_v13, %v1108_v30  ;;  %v1155_v24 = vmul.f32 %v1153_v5, %v1109_v31 }
 0x1a5   : > { %v1160_v46 = vperm.slane %v1154_v11, 0  ;;  %v1161_v12 = vperm.slane %v1155_v24, 0 }
 0x1a7   : > { %v1158_v36 = vpop.permute.xlu1 %1157 }
 0x1a8   : > { %v1162_v32 = vmul.f32 %v1160_v46, %v1158_v36  ;;  %v1163_v35 = vmul.f32 %v1161_v12, %v1158_v36 }
 0x1a9   : > { %v1169_v53 = vpop.permute.xlu0 %1168 }
 0x1aa   : > { %v1170_v0 = vsel %vm1101_vm5, %v1167_v44, %v1169_v53  ;;  %v1174_v17 = vsel %vm1101_vm5, %v1169_v53, %v1167_v44  ;;  %v1165_v36 = vadd.f32 %v1163_v35, %v1144_v6 }
 0x1ab   : > { %v1238_v25 = vpop.permute.xlu2 %1237  ;;  %v1175_v16 = vmul.f32 %v1170_v0, %v1108_v30  ;;  %v1176_v9 = vmul.f32 %v1174_v17, %v1109_v31  ;;  %v1143_v30 = vadd.f32 %v1141_v14, %v1122_v41 }
 0x1ad   : > { %v1181_v37 = vperm.slane %v1175_v16, 0  ;;  %v1182_v26 = vperm.slane %v1176_v9, 0  ;;  %v1164_v44 = vadd.f32 %v1162_v32, %v1143_v30 }
 0x1b0   : > { %v2721_v54 = vpop.permute.xlu1 %1178 }
 0x1b1   : > { %v1192_v60 = vpop.permute.xlu0 %1191  ;;  %v1183_v53 = vmul.f32 %v1181_v37, %v2721_v54 }
 0x1b2   : > { %v1194_v23 = vsel %vm1193_vm6, %v1190_v52, %v1192_v60  ;;  %v1198_v20 = vsel %vm1193_vm6, %v1192_v60, %v1190_v52  ;;  %v1280_v52 = vld [vmem:[#allocation6 + $0x10] ss:$8 sm:$0x3] }
 0x1b3   : > { %v1259_v57 = vpop.permute.xlu2 %1258  ;;  %v1204_v29 = vmul.f32 %v1200_v18, %v1194_v23  ;;  %v1205_v58 = vmul.f32 %v1201_v28, %v1198_v20  ;;  %v1292_v62 = vperm.slane %v1280_v52, 0  ;;  %v1293_v63 = vperm.slane %v1280_v52, 1 }
 0x1b4   : > { %v1185_v10 = vadd.f32 %v1183_v53, %v1164_v44 }
 0x1b5   : > { %v1210_v2 = vperm.slane %v1204_v29, 0  ;;  %v1211_v4 = vperm.slane %v1205_v58, 0 }
 0x1b9   : > { %v1219_v38 = vpop.permute.xlu0 %1218  ;;  %v2723_v55 = vpop.permute.xlu1 %1207 }
 0x1ba   : > { %v1220_v21 = vsel %vm1193_vm6, %v1217_v48, %v1219_v38  ;;  %v1224_v34 = vsel %vm1193_vm6, %v1219_v38, %v1217_v48  ;;  %v1184_v48 = vmul.f32 %v1182_v26, %v2721_v54  ;;  %v1212_v42 = vmul.f32 %v1210_v2, %v2723_v55 }
 0x1bb   : > { %v1284_v39 = vpop.permute.xlu2 %1283  ;;  %v1225_v31 = vmul.f32 %v1220_v21, %v1200_v18  ;;  %v1226_v40 = vmul.f32 %v1224_v34, %v1201_v28 }
 0x1bc   : > { %v1186_v1 = vadd.f32 %v1184_v48, %v1165_v36 }
 0x1bd   : > { %v1231_v60 = vperm.slane %v1225_v31, 0  ;;  %v1232_v38 = vperm.slane %v1226_v40, 0 }
 0x1c1   : > { %v1240_v56 = vpop.permute.xlu0 %1239 }
 0x1c2   : > { %v2725_v49 = vpop.permute.xlu1 %1228  ;;  %v1241_v45 = vsel %vm1193_vm6, %v1238_v25, %v1240_v56  ;;  %v1245_v27 = vsel %vm1193_vm6, %v1240_v56, %v1238_v25  ;;  %v1213_v56 = vmul.f32 %v1211_v4, %v2723_v55 }
 0x1c3   : > { %v1271_v22 = vpop.permute.xlu2 %1270  ;;  %v1246_v47 = vmul.f32 %v1241_v45, %v1200_v18  ;;  %v1247_v50 = vmul.f32 %v1245_v27, %v1201_v28  ;;  %v1233_v15 = vmul.f32 %v1231_v60, %v2725_v49 }
 0x1c5   : > { %v1252_v13 = vperm.slane %v1246_v47, 0  ;;  %v1253_v5 = vperm.slane %v1247_v50, 0 }
 0x1c9   : > { %v1261_v61 = vpop.permute.xlu0 %1260 }
 0x1ca   : > { %v1262_v41 = vsel %vm1193_vm6, %v1259_v57, %v1261_v61  ;;  %v1266_v25 = vsel %vm1193_vm6, %v1261_v61, %v1259_v57  ;;  %v1234_v57 = vmul.f32 %v1232_v38, %v2725_v49 }
 0x1cb   : > { %v2729_v3 = vpop.permute.xlu1 %1249  ;;  %v1267_v54 = vmul.f32 %v1262_v41, %v1200_v18  ;;  %v1268_v11 = vmul.f32 %v1266_v25, %v1201_v28  ;;  %v1300_v24 = vpop.permute.xlu2 %1299  ;;  %v1215_v18 = vadd.f32 %v1213_v56, %v1186_v1 }
 0x1cc   : > { %v1254_v28 = vmul.f32 %v1252_v13, %v2729_v3 }
 0x1cd   : > { %v1273_v23 = vperm.slane %v1267_v54, 0  ;;  %v1274_v20 = vperm.slane %v1268_v11, 0  ;;  %v1236_v29 = vadd.f32 %v1234_v57, %v1215_v18 }
 0x1cf   : > { %v1275_v37 = vmul.f32 %v1273_v23, %v1271_v22  ;;  %v1276_v26 = vmul.f32 %v1274_v20, %v1271_v22 }
 0x1d1   : > { %v2733_v8 = vpop.permute.xlu0 %1308 }
 0x1d3   : > { %v1282_v19 = vpop.permute.xlu1 %1281  ;;  %v1321_v31 = vpop.permute.xlu2 %1320 }
 0x1d4   : > { %v1286_v59 = vsel %vm1285_vm7, %v1282_v19, %v1284_v39  ;;  %v1290_v51 = vsel %vm1285_vm7, %v1284_v39, %v1282_v19  ;;  %v1214_v39 = vadd.f32 %v1212_v42, %v1185_v10  ;;  %v1255_v19 = vmul.f32 %v1253_v5, %v2729_v3 }
 0x1d5   : > { %v1296_v61 = vmul.f32 %v1292_v62, %v1286_v59  ;;  %v1297_v0 = vmul.f32 %v1293_v63, %v1290_v51  ;;  %v1374_v10 = vstv %s1371_s23 }
 0x1d6   : > { %v1235_v7 = vadd.f32 %v1233_v15, %v1214_v39  ;;  %v1257_v35 = vadd.f32 %v1255_v19, %v1236_v29 }
 0x1d7   : > { %v1302_v58 = vperm.slane %v1296_v61, 0 }
 0x1d8   : > { %v1256_v32 = vadd.f32 %v1254_v28, %v1235_v7  ;;  %v1278_v44 = vadd.f32 %v1276_v26, %v1257_v35 }
 0x1d9   : > { %v1330_v33 = vpop.permute.xlu0 %1329  ;;  %v1304_v27 = vmul.f32 %v1302_v58, %v1300_v24 }
 0x1db   : > { %v1311_v43 = vpop.permute.xlu1 %1310 }
 0x1dc   : > { %v1312_v55 = vsel %vm1285_vm7, %v2733_v8, %v1311_v43  ;;  %v1316_v17 = vsel %vm1285_vm7, %v1311_v43, %v2733_v8  ;;  %v1303_v8 = vperm.slane %v1297_v0, 0  ;;  %v1277_v43 = vadd.f32 %v1275_v37, %v1256_v32 }
 0x1dd   : > { %v1317_v9 = vmul.f32 %v1312_v55, %v1292_v62  ;;  %v1318_v14 = vmul.f32 %v1316_v17, %v1293_v63 }
 0x1de   : > { %v1305_v30 = vmul.f32 %v1303_v8, %v1300_v24  ;;  %v1306_v53 = vadd.f32 %v1304_v27, %v1277_v43  ;;  %v1373_v24 = vld [vmem:[%s2343_s2] sm:$0xff]  ;;  %s1388_s2 = scalar_lea.sflag [#allocation4], %s2337_s26 }
 0x1df   : > { %v1323_v45 = vperm.slane %v1317_v9, 0  ;;  %v1324_v3 = vperm.slane %v1318_v14, 0  ;;  %v1375_v15 = vmul.f32 %v1374_v10, %v1373_v24 }
 0x1e0   : > { %v1307_v48 = vadd.f32 %v1305_v30, %v1278_v44 }
 0x1e1   : > { %v1351_v46 = vpop.permute.xlu0 %1350  ;;  %v1325_v50 = vmul.f32 %v1323_v45, %v1321_v31  ;;  %v1326_v52 = vmul.f32 %v1324_v3, %v1321_v31 }
 0x1e3   : > { %v1332_v12 = vpop.permute.xlu1 %1331  ;;  %v1327_v41 = vadd.f32 %v1325_v50, %v1306_v53  ;;  %v1328_v25 = vadd.f32 %v1326_v52, %v1307_v48 }
 0x1e4   : > { %v1333_v49 = vsel %vm1285_vm7, %v1330_v33, %v1332_v12  ;;  %v1337_v16 = vsel %vm1285_vm7, %v1332_v12, %v1330_v33 }
 0x1e5   : > { %v1338_v21 = vmul.f32 %v1333_v49, %v1292_v62  ;;  %v1339_v34 = vmul.f32 %v1337_v16, %v1293_v63 }
 0x1e7   : > { %v1344_v6 = vperm.slane %v1338_v21, 0  ;;  %v1345_v33 = vperm.slane %v1339_v34, 0 }
 0x1e9   : > { %v1342_v47 = vpop.permute.xlu0 %1341 }
 0x1ea   : > { %v1346_v60 = vmul.f32 %v1344_v6, %v1342_v47  ;;  %v1347_v38 = vmul.f32 %v1345_v33, %v1342_v47 }
 0x1eb   : > { %v1353_v40 = vpop.permute.xlu1 %1352 }
 0x1ec   : > { %v1354_v2 = vsel %vm1285_vm7, %v1351_v46, %v1353_v40  ;;  %v1358_v4 = vsel %vm1285_vm7, %v1353_v40, %v1351_v46  ;;  %v1348_v5 = vadd.f32 %v1346_v60, %v1327_v41  ;;  %v1349_v59 = vadd.f32 %v1347_v38, %v1328_v25 }
 0x1ed   : > { %v1359_v36 = vmul.f32 %v1354_v2, %v1292_v62  ;;  %v1360_v22 = vmul.f32 %v1358_v4, %v1293_v63  ;;  %v1376_v62 = vstv %s1608_s3 }
 0x1ef   : > { %v1365_v42 = vperm.slane %v1359_v36, 0  ;;  %v1366_v56 = vperm.slane %v1360_v22, 0 }
 0x1f3   : > { %v1363_v13 = vpop.permute.xlu1 %1362 }
 0x1f4   : > { %v1367_v51 = vmul.f32 %v1365_v42, %v1363_v13  ;;  %v1368_v54 = vmul.f32 %v1366_v56, %v1363_v13 }
 0x1f6   : > { %v1369_v11 = vadd.f32 %v1367_v51, %v1348_v5  ;;  %v1370_v63 = vadd.f32 %v1368_v54, %v1349_v59 }
 0x1f8   : > { %v1378_v1 = vmul.f32 %v1376_v62, %v1370_v63  ;;  %v1377_v57 = vmul.f32 %v1376_v62, %v1369_v11 }
 0x1fa   : > { %v1381_v61 = vrot.slane %v1378_v1, 4 }
 0x1fc   : > { %v1383_v0 = vsel %vm1382_vm8, %v1377_v57, %v1381_v61 }
 0x1fd   : > { %v1385_v55 = vadd.f32 %v1383_v0, %v1375_v15 }
 0x1ff   : > { %1386 = vst [vmem:[%s458_s28] sm:$0xff] %v1385_v55 }
 0x200   : > { %2034 = shalt.err (!%p2031_p9)
}
 0x201   : > { %1650 = dma.vmem_to_hbm [thread:$0]  (%p2306_p4), %s1402_s29, 128, %s1404_s16, %s1388_s2  }
 0x202 PF: > { %s1415_s26 = sand.u32 1, %s2081_s30   ;;  %p2824_p10 = scmp.ge.s32.totalorder %s2093_s12, 2 }
 0x203   : > { %s1416_s23 = scalar_lea.sflag [#allocation4], %s1415_s26 }
 0x204   : > { %p1682_p13 = pnand %p2824_p10, %p2310_p6 }
 0x206   : > { %p1683_p11 = pneg %p1682_p13 }
 0x208   : > { %2076 = dma.done.wait (%p1683_p11), %s1416_s23, 128  }
 0x209   : > { %2078 = vsyncadd (%p1683_p11), %s1416_s23, 4294967168  ;;  %p27_p0 = scmp.ge.s32.totalorder %s2280_s24, 4   ;;  %s2825_s30 = smov %s2085_s10 }
 0x20a   : > { %s2826_s10 = smov %s2089_s11  ;;  %s2827_s11 = smov %s2291_s19 }
 0x20b   : > { %s2828_s12 = smov %s2280_s24  ;;  %29 = sbr.rel (!%p27_p0) target bundleno = 15 (0xf), region = 144 }
 0x210   :  { %1422 = vsyncpa [#allocation3], 1 }
 0x211   :  { %1424 = vsyncpa [#allocation3 + $0x1], 1 }
 0x212   :  { %1425 = vsyncpa [#allocation7], 1 }
 0x213   :  { %1426 = vsyncpa [#allocation4], 1 }
 0x214   :  { %1428 = vsyncpa [#allocation4 + $0x1], 1 }
 0x215   :  { %1429 = vsyncpa [#allocation5], 1 }
 0x216   :  { %1431 = vsyncpa [#allocation5 + $0x1], 1 }
 0x217   :  { %1432 = vsyncpa [#allocation11], 1 }
 0x218   :  { %1433 = vsyncpa [#allocation14], 1 }
 0x219   :  { %1434 = vsyncpa [#allocation17], 1 }

</bundles_post_ra>
